<compile_context>
chip_gen: v7x
topology: tpu7x:2x2x1
jax: 0.10.0
libtpu: 0.0.40
codegen_flags: <defaults>
</compile_context>

<pallas_src>
import functools

import jax
import jax.numpy as jnp
from jax.experimental import pallas as pl
from jax.experimental.pallas import tpu as pltpu


# ----------------------------- kernel ---------------------------------------

def _layernorm(x, gamma, beta, eps=1e-5):
    mu = jnp.mean(x, axis=-1, keepdims=True)
    var = jnp.mean((x - mu) ** 2, axis=-1, keepdims=True)
    return (x - mu) * jax.lax.rsqrt(var + eps) * gamma + beta


def fused_transformer_kernel(n_heads, d_head,
                             x_ref, bias_ref,
                             wqkv_ref, bqkv_ref, wout_ref, bout_ref,
                             g1_ref, b1_ref,
                             wff1_ref, bff1_ref, wff2_ref, bff2_ref,
                             g2_ref, b2_ref,
                             o_ref, acc_ref):
    layer = pl.program_id(1)
    n_layers = pl.num_programs(1)

    # Load the batch item's activation into the resident VMEM scratch once.
    @pl.when(layer == 0)
    def _():
        acc_ref[...] = x_ref[0]

    x = acc_ref[...]                                   # (seq, d_model) f32
    seq, d_model = x.shape
    hd = n_heads * d_head

    xb = x.astype(jnp.bfloat16)

    # Fused QKV projection: bf16 MXU, f32 accumulation.
    qkv = jnp.dot(xb, wqkv_ref[0],
                  preferred_element_type=jnp.float32) + bqkv_ref[0]

    scale = 1.0 / (d_head ** 0.5)
    q = qkv[:, 0 * hd:1 * hd] * scale                  # fold scale into q
    k = qkv[:, 1 * hd:2 * hd]
    v = qkv[:, 2 * hd:3 * hd]

    # Head-major (heads, seq, d_head): all heads batched through the MXU.
    qh = jnp.transpose(q.reshape(seq, n_heads, d_head), (1, 0, 2)).astype(jnp.bfloat16)
    kh = jnp.transpose(k.reshape(seq, n_heads, d_head), (1, 0, 2)).astype(jnp.bfloat16)
    vh = jnp.transpose(v.reshape(seq, n_heads, d_head), (1, 0, 2)).astype(jnp.bfloat16)

    # Scores + additive mask bias (single add, no per-head compare/select).
    # NOTE: for long sequences, tile the q dimension here (online softmax)
    # instead of materializing the full (heads, seq, seq) score tensor.
    s = jnp.einsum('hqd,hkd->hqk', qh, kh,
                   preferred_element_type=jnp.float32)
    s = s + bias_ref[...][None, :, :]
    s = s - jnp.max(s, axis=-1, keepdims=True)
    p = jnp.exp(s)
    p = p * pl.reciprocal(jnp.sum(p, axis=-1, keepdims=True), approx=True)

    ctx = jnp.einsum('hqk,hkd->hqd', p.astype(jnp.bfloat16), vh,
                     preferred_element_type=jnp.float32)
    attn = jnp.transpose(ctx, (1, 0, 2)).reshape(seq, hd)

    attn_out = jnp.dot(attn.astype(jnp.bfloat16), wout_ref[0],
                       preferred_element_type=jnp.float32) + bout_ref[0]
    h1 = _layernorm(x + attn_out, g1_ref[0], b1_ref[0])

    # Feed-forward (ReLU), bf16 matmuls, f32 accumulation / residual / LN.
    ff = jnp.maximum(
        jnp.dot(h1.astype(jnp.bfloat16), wff1_ref[0],
                preferred_element_type=jnp.float32) + bff1_ref[0], 0.0)
    ff = jnp.dot(ff.astype(jnp.bfloat16), wff2_ref[0],
                 preferred_element_type=jnp.float32) + bff2_ref[0]
    h2 = _layernorm(h1 + ff, g2_ref[0], b2_ref[0])

    acc_ref[...] = h2

    @pl.when(layer == n_layers - 1)
    def _():
        o_ref[0] = h2


# ----------------------------- wrapper ---------------------------------------

def transformer_forward(x, mask_bias, stacked_params, n_heads, d_head):
    """Fused forward of the whole decoder stack (dense_out=False, dropout=0)."""
    bs, seq, d_model = x.shape
    (wqkv, bqkv, wout, bout, g1, b1,
     wff1, bff1, wff2, bff2, g2, b2) = stacked_params
    n_layers = wqkv.shape[0]
    hd = n_heads * d_head
    d_inner = wff1.shape[-1]

    def wspec(arr):
        block = (1,) + tuple(arr.shape[1:])
        ndim = arr.ndim
        return pl.BlockSpec(block, lambda b, l: (l,) + (0,) * (ndim - 1))

    in_specs = [
        pl.BlockSpec((1, seq, d_model), lambda b, l: (b, 0, 0)),   # x
        pl.BlockSpec((seq, seq), lambda b, l: (0, 0)),             # mask bias
        wspec(wqkv), wspec(bqkv), wspec(wout), wspec(bout),
        wspec(g1), wspec(b1),
        wspec(wff1), wspec(bff1), wspec(wff2), wspec(bff2),
        wspec(g2), wspec(b2),
    ]
    out_spec = pl.BlockSpec((1, seq, d_model), lambda b, l: (b, 0, 0))

    # --- rough VMEM budget (weights double-buffered across the layer axis) ---
    layer_bytes = sum((int(a.size) // int(a.shape[0])) * a.dtype.itemsize
                      for a in stacked_params)
    act_bytes = seq * d_model * 4
    vmem_needed = 2 * layer_bytes + 5 * act_bytes + 2 * seq * seq * 4
    vmem_limit = max(32 * 1024 * 1024,
                     min(100 * 1024 * 1024, 2 * vmem_needed))

    # --- advisory cost estimate for the XLA scheduler ---
    flops = int(2 * bs * n_layers * seq *
                (d_model * 3 * hd + 2 * seq * hd + hd * d_model
                 + 2 * d_model * d_inner))
    transcendentals = int(bs * n_layers * n_heads * seq * seq)
    bytes_accessed = int(2 * x.size * 4 + mask_bias.size * 4
                         + sum(int(a.size) * a.dtype.itemsize
                               for a in stacked_params))

    kernel = functools.partial(fused_transformer_kernel, n_heads, d_head)
    return pl.pallas_call(
        kernel,
        out_shape=jax.ShapeDtypeStruct((bs, seq, d_model), jnp.float32),
        grid_spec=pltpu.PrefetchScalarGridSpec(
            num_scalar_prefetch=0,
            grid=(bs, n_layers),
            in_specs=in_specs,
            out_specs=out_spec,
            scratch_shapes=[pltpu.VMEM((seq, d_model), jnp.float32)],
        ),
        compiler_params=pltpu.CompilerParams(
            dimension_semantics=("parallel", "arbitrary"),
            vmem_limit_bytes=int(vmem_limit),
        ),
        cost_estimate=pl.CostEstimate(
            flops=flops, transcendentals=transcendentals,
            bytes_accessed=bytes_accessed),
    )(x, mask_bias, wqkv, bqkv, wout, bout, g1, b1,
      wff1, bff1, wff2, bff2, g2, b2)


# ----------------------------- params / reference ----------------------------

def init_layer_params(key, n_heads, d_model, d_head, d_inner):
    """Per-layer params. Matmul weights stored in bf16 (MXU inputs), the rest f32."""
    hd = n_heads * d_head
    ks = jax.random.split(key, 10)
    wqkv = (jax.random.normal(ks[0], (d_model, 3 * hd), jnp.float32) * 0.05
            ).astype(jnp.bfloat16)
    bqkv = jax.random.normal(ks[1], (1, 3 * hd), jnp.float32) * 0.02
    wout = (jax.random.normal(ks[2], (hd, d_model), jnp.float32) * 0.05
            ).astype(jnp.bfloat16)
    bout = jax.random.normal(ks[3], (1, d_model), jnp.float32) * 0.02
    g1 = 1.0 + jax.random.normal(ks[4], (1, d_model), jnp.float32) * 0.02
    b1 = jax.random.normal(ks[5], (1, d_model), jnp.float32) * 0.02
    wff1 = (jax.random.normal(ks[6], (d_model, d_inner), jnp.float32) * 0.05
            ).astype(jnp.bfloat16)
    bff1 = jax.random.normal(ks[7], (1, d_inner), jnp.float32) * 0.02
    wff2 = (jax.random.normal(ks[8], (d_inner, d_model), jnp.float32) * 0.05
            ).astype(jnp.bfloat16)
    bff2 = jax.random.normal(ks[9], (1, d_model), jnp.float32) * 0.02
    g2 = 1.0 + jax.random.normal(ks[4], (1, d_model), jnp.float32) * 0.02
    b2 = jax.random.normal(ks[5], (1, d_model), jnp.float32) * 0.02
    return (wqkv, bqkv, wout, bout, g1, b1, wff1, bff1, wff2, bff2, g2, b2)


def reference_forward(x, mask_bool, layer_params, n_heads, d_head):
    """Pure-JAX (f32) reference mirroring the PyTorch module (dropout p=0)."""
    def ln(v, g, b, eps=1e-5):
        mu = v.mean(-1, keepdims=True)
        var = ((v - mu) ** 2).mean(-1, keepdims=True)
        return (v - mu) / jnp.sqrt(var + eps) * g + b

    inp = x
    bs, seq, d_model = x.shape
    for (wqkv, bqkv, wout, bout, g1, b1, wff1, bff1, wff2, bff2, g2, b2) in layer_params:
        qkv = inp @ wqkv + bqkv
        hd = n_heads * d_head
        q, k, v = qkv[..., :hd], qkv[..., hd:2 * hd], qkv[..., 2 * hd:]
        rs = lambda t: t.reshape(bs, seq, n_heads, d_head).transpose(0, 2, 1, 3)
        q, k, v = rs(q), rs(k), rs(v)
        s = jnp.einsum("bhqd,bhkd->bhqk", q, k) / (d_head ** 0.5)
        s = jnp.where(mask_bool[None, None], -1e9, s)
        p = jax.nn.softmax(s, axis=-1)
        av = jnp.einsum("bhqk,bhkd->bhqd", p, v).transpose(0, 2, 1, 3).reshape(bs, seq, hd)
        h1 = ln(inp + av @ wout + bout, g1, b1)
        ff = jnp.maximum(h1 @ wff1 + bff1, 0.0) @ wff2 + bff2
        inp = ln(h1 + ff, g2, b2)
    return inp


# ----------------------------- main -------------------------------------------

if __name__ == "__main__":
    n_layers, n_heads, d_model, d_head, d_inner = 2, 4, 32, 8, 64
    bs, seq = 2, 8

    key = jax.random.PRNGKey(0)
    kx, *layer_keys = jax.random.split(key, n_layers + 1)
    x = jax.random.normal(kx, (bs, seq, d_model), jnp.float32)

    per_layer = [init_layer_params(k, n_heads, d_model, d_head, d_inner)
                 for k in layer_keys]
    # Stack each param along a leading layer axis for the fused kernel.
    stacked = tuple(jnp.stack([p[i] for p in per_layer], axis=0)
                    for i in range(len(per_layer[0])))

    # Causal mask: True above the diagonal == masked (torch masked_fill).
    mask_bool = jnp.triu(jnp.ones((seq, seq), jnp.bool_), k=1)
    # Additive bias form used by the kernel (equivalent after softmax).
    mask_bias = jnp.where(mask_bool, jnp.float32(-1e9), jnp.float32(0.0))

    out = transformer_forward(x, mask_bias, stacked, n_heads, d_head)
    out = jax.block_until_ready(out)

    # Reference uses the same (bf16-quantized) weights, upcast to f32; the
    # kernel additionally quantizes activations to bf16 at MXU inputs and uses
    # the approximate reciprocal, hence the modest tolerance.
    ref_params = [tuple(w.astype(jnp.float32) for w in p) for p in per_layer]
    ref = reference_forward(x, mask_bool, ref_params, n_heads, d_head)

    assert out.shape == (bs, seq, d_model)
    assert jnp.allclose(out, ref, rtol=2e-2, atol=2e-2), "mismatch vs JAX reference"

    print("KERNEL_OK")
</pallas_src>

<mosaic_0001>
module attributes {stable_mosaic.version = 11 : i64} {
  func.func @fused_transformer_kernel(%arg0: i32, %arg1: i32, %arg2: memref<1x8x32xf32, #tpu.memory_space<vmem>>, %arg3: memref<8x8xf32, #tpu.memory_space<vmem>>, %arg4: memref<1x32x96xbf16, #tpu.memory_space<vmem>>, %arg5: memref<1x1x96xf32, #tpu.memory_space<vmem>>, %arg6: memref<1x32x32xbf16, #tpu.memory_space<vmem>>, %arg7: memref<1x1x32xf32, #tpu.memory_space<vmem>>, %arg8: memref<1x1x32xf32, #tpu.memory_space<vmem>>, %arg9: memref<1x1x32xf32, #tpu.memory_space<vmem>>, %arg10: memref<1x32x64xbf16, #tpu.memory_space<vmem>>, %arg11: memref<1x1x64xf32, #tpu.memory_space<vmem>>, %arg12: memref<1x64x32xbf16, #tpu.memory_space<vmem>>, %arg13: memref<1x1x32xf32, #tpu.memory_space<vmem>>, %arg14: memref<1x1x32xf32, #tpu.memory_space<vmem>>, %arg15: memref<1x1x32xf32, #tpu.memory_space<vmem>>, %arg16: memref<1x8x32xf32, #tpu.memory_space<vmem>>, %arg17: memref<8x32xf32, #tpu.memory_space<vmem>>) attributes {dimension_semantics = [#tpu.dimension_semantics<parallel>, #tpu.dimension_semantics<arbitrary>], iteration_bounds = array<i64: 2, 2>, scalar_prefetch = 0 : i64, scratch_operands = 1 : i64, tpu.core_type = #tpu.core_type<tc>, window_params = [{transform_indices = @transform_0, window_bounds = array<i64: 1, 8, 32>}, {pipeline_mode = #tpu.pipeline_mode<synchronous>, transform_indices = @transform_1, window_bounds = array<i64: 8, 8>}, {transform_indices = @transform_2, window_bounds = array<i64: 1, 32, 96>}, {transform_indices = @transform_3, window_bounds = array<i64: 1, 1, 96>}, {transform_indices = @transform_4, window_bounds = array<i64: 1, 32, 32>}, {transform_indices = @transform_5, window_bounds = array<i64: 1, 1, 32>}, {transform_indices = @transform_6, window_bounds = array<i64: 1, 1, 32>}, {transform_indices = @transform_7, window_bounds = array<i64: 1, 1, 32>}, {transform_indices = @transform_8, window_bounds = array<i64: 1, 32, 64>}, {transform_indices = @transform_9, window_bounds = array<i64: 1, 1, 64>}, {transform_indices = @transform_10, window_bounds = array<i64: 1, 64, 32>}, {transform_indices = @transform_11, window_bounds = array<i64: 1, 1, 32>}, {transform_indices = @transform_12, window_bounds = array<i64: 1, 1, 32>}, {transform_indices = @transform_13, window_bounds = array<i64: 1, 1, 32>}, {transform_indices = @transform_14, window_bounds = array<i64: 1, 8, 32>}]} {
    %c0_i32 = arith.constant 0 : i32
    %0 = arith.cmpi eq, %arg1, %c0_i32 : i32
    %1 = arith.extui %0 : i1 to i32
    %c0_i32_0 = arith.constant 0 : i32
    %2 = arith.cmpi ne, %1, %c0_i32_0 : i32
    scf.if %2 {
      %c0_62 = arith.constant 0 : index
      %c0_63 = arith.constant 0 : index
      %c0_64 = arith.constant 0 : index
      %129 = vector.load %arg2[%c0_62, %c0_63, %c0_64] : memref<1x8x32xf32, #tpu.memory_space<vmem>>, vector<1x8x32xf32>
      %130 = vector.shape_cast %129 : vector<1x8x32xf32> to vector<8x32xf32>
      %c0_65 = arith.constant 0 : index
      %c0_66 = arith.constant 0 : index
      %131 = vector.load %arg17[%c0_65, %c0_66] : memref<8x32xf32, #tpu.memory_space<vmem>>, vector<8x32xf32>
      tpu.vector_store %arg17[%c0_65, %c0_66], %130 {strides = array<i32>} : memref<8x32xf32, #tpu.memory_space<vmem>>, vector<8x32xf32>,
    } else {
    }
    %c0 = arith.constant 0 : index
    %c0_1 = arith.constant 0 : index
    %3 = vector.load %arg17[%c0, %c0_1] : memref<8x32xf32, #tpu.memory_space<vmem>>, vector<8x32xf32>
    %4 = arith.truncf %3 : vector<8x32xf32> to vector<8x32xbf16>
    %c0_2 = arith.constant 0 : index
    %c0_3 = arith.constant 0 : index
    %c0_4 = arith.constant 0 : index
    %5 = vector.load %arg4[%c0_2, %c0_3, %c0_4] : memref<1x32x96xbf16, #tpu.memory_space<vmem>>, vector<1x32x96xbf16>
    %6 = vector.shape_cast %5 : vector<1x32x96xbf16> to vector<32x96xbf16>
    %cst = arith.constant dense<0.000000e+00> : vector<8x96xf32>
    %7 = tpu.matmul %4, %6, %cst {dimension_numbers = #tpu.dot_dimension_numbers<[1], [0], [0], [1], [0, 0, 1, 1], [], []>} : vector<8x32xbf16>, vector<32x96xbf16>, vector<8x96xf32> -> vector<8x96xf32>
    %c0_5 = arith.constant 0 : index
    %c0_6 = arith.constant 0 : index
    %c0_7 = arith.constant 0 : index
    %8 = vector.load %arg5[%c0_5, %c0_6, %c0_7] : memref<1x1x96xf32, #tpu.memory_space<vmem>>, vector<1x1x96xf32>
    %9 = vector.shape_cast %8 : vector<1x1x96xf32> to vector<1x96xf32>
    %10 = vector.broadcast %9 : vector<1x96xf32> to vector<8x96xf32>
    %11 = arith.addf %7, %10 : vector<8x96xf32>
    %12 = vector.extract_strided_slice %11 {offsets = [0, 0], sizes = [8, 32], strides = [1, 1]} : vector<8x96xf32> to vector<8x32xf32>
    %cst_8 = arith.constant 0.353553385 : f32
    %13 = vector.broadcast %cst_8 : f32 to vector<8x32xf32>
    %14 = arith.mulf %12, %13 : vector<8x32xf32>
    %15 = vector.extract_strided_slice %11 {offsets = [0, 32], sizes = [8, 32], strides = [1, 1]} : vector<8x96xf32> to vector<8x32xf32>
    %16 = vector.extract_strided_slice %11 {offsets = [0, 64], sizes = [8, 32], strides = [1, 1]} : vector<8x96xf32> to vector<8x32xf32>
    %17 = vector.shape_cast %14 : vector<8x32xf32> to vector<8x4x8xf32>
    %18 = tpu.transpose %17, [1, 0, 2] : vector<8x4x8xf32> -> vector<4x8x8xf32>
    %19 = arith.truncf %18 : vector<4x8x8xf32> to vector<4x8x8xbf16>
    %20 = vector.shape_cast %15 : vector<8x32xf32> to vector<8x4x8xf32>
    %21 = tpu.transpose %20, [1, 0, 2] : vector<8x4x8xf32> -> vector<4x8x8xf32>
    %22 = arith.truncf %21 : vector<4x8x8xf32> to vector<4x8x8xbf16>
    %23 = vector.shape_cast %16 : vector<8x32xf32> to vector<8x4x8xf32>
    %24 = tpu.transpose %23, [1, 0, 2] : vector<8x4x8xf32> -> vector<4x8x8xf32>
    %25 = arith.truncf %24 : vector<4x8x8xf32> to vector<4x8x8xbf16>
    "tpu.trace_start"() <{level = 10 : i32, message = "hqd,hkd->hqk"}> : () -> ()
    %cst_9 = arith.constant dense<0.000000e+00> : vector<4x8x8xf32>
    %26 = tpu.matmul %19, %22, %cst_9 {dimension_numbers = #tpu.dot_dimension_numbers<[2], [2], [1], [1], [0, 0, 0, 1, 1, 1], [0], [0]>} : vector<4x8x8xbf16>, vector<4x8x8xbf16>, vector<4x8x8xf32> -> vector<4x8x8xf32>
    "tpu.trace_stop"() : () -> ()
    %c0_10 = arith.constant 0 : index
    %c0_11 = arith.constant 0 : index
    %27 = vector.load %arg3[%c0_10, %c0_11] : memref<8x8xf32, #tpu.memory_space<vmem>>, vector<8x8xf32>
    %28 = vector.shape_cast %27 : vector<8x8xf32> to vector<1x8x8xf32>
    %29 = vector.broadcast %28 : vector<1x8x8xf32> to vector<4x8x8xf32>
    %30 = arith.addf %26, %29 : vector<4x8x8xf32>
    %cst_12 = arith.constant dense<0xFF800000> : vector<4x8xf32>
    %31 = vector.multi_reduction <maximumf>, %30, %cst_12 [2] : vector<4x8x8xf32> to vector<4x8xf32>
    %32 = vector.shape_cast %31 : vector<4x8xf32> to vector<4x8x1xf32>
    %33 = vector.broadcast %32 : vector<4x8x1xf32> to vector<4x8x8xf32>
    %34 = arith.subf %30, %33 : vector<4x8x8xf32>
    %35 = math.exp %34 : vector<4x8x8xf32>
    %cst_13 = arith.constant dense<0.000000e+00> : vector<4x8xf32>
    %36 = vector.multi_reduction <add>, %35, %cst_13 [2] : vector<4x8x8xf32> to vector<4x8xf32>
    %37 = vector.shape_cast %36 : vector<4x8xf32> to vector<4x8x1xf32>
    %38 = tpu.reciprocal %37 {approx = true} : vector<4x8x1xf32> -> vector<4x8x1xf32>
    %39 = vector.broadcast %38 : vector<4x8x1xf32> to vector<4x8x8xf32>
    %40 = arith.mulf %35, %39 : vector<4x8x8xf32>
    %41 = arith.truncf %40 : vector<4x8x8xf32> to vector<4x8x8xbf16>
    "tpu.trace_start"() <{level = 10 : i32, message = "hqk,hkd->hqd"}> : () -> ()
    %cst_14 = arith.constant dense<0.000000e+00> : vector<4x8x8xf32>
    %42 = tpu.matmul %41, %25, %cst_14 {dimension_numbers = #tpu.dot_dimension_numbers<[2], [1], [1], [2], [0, 0, 0, 1, 1, 2], [0], [0]>} : vector<4x8x8xbf16>, vector<4x8x8xbf16>, vector<4x8x8xf32> -> vector<4x8x8xf32>
    "tpu.trace_stop"() : () -> ()
    %43 = tpu.transpose %42, [1, 0, 2] : vector<4x8x8xf32> -> vector<8x4x8xf32>
    %44 = vector.shape_cast %43 : vector<8x4x8xf32> to vector<8x32xf32>
    %45 = arith.truncf %44 : vector<8x32xf32> to vector<8x32xbf16>
    %c0_15 = arith.constant 0 : index
    %c0_16 = arith.constant 0 : index
    %c0_17 = arith.constant 0 : index
    %46 = vector.load %arg6[%c0_15, %c0_16, %c0_17] : memref<1x32x32xbf16, #tpu.memory_space<vmem>>, vector<1x32x32xbf16>
    %47 = vector.shape_cast %46 : vector<1x32x32xbf16> to vector<32x32xbf16>
    %cst_18 = arith.constant dense<0.000000e+00> : vector<8x32xf32>
    %48 = tpu.matmul %45, %47, %cst_18 {dimension_numbers = #tpu.dot_dimension_numbers<[1], [0], [0], [1], [0, 0, 1, 1], [], []>} : vector<8x32xbf16>, vector<32x32xbf16>, vector<8x32xf32> -> vector<8x32xf32>
    %c0_19 = arith.constant 0 : index
    %c0_20 = arith.constant 0 : index
    %c0_21 = arith.constant 0 : index
    %49 = vector.load %arg7[%c0_19, %c0_20, %c0_21] : memref<1x1x32xf32, #tpu.memory_space<vmem>>, vector<1x1x32xf32>
    %50 = vector.shape_cast %49 : vector<1x1x32xf32> to vector<1x32xf32>
    %51 = vector.broadcast %50 : vector<1x32xf32> to vector<8x32xf32>
    %52 = arith.addf %48, %51 : vector<8x32xf32>
    %53 = arith.addf %3, %52 : vector<8x32xf32>
    %c0_22 = arith.constant 0 : index
    %c0_23 = arith.constant 0 : index
    %c0_24 = arith.constant 0 : index
    %54 = vector.load %arg8[%c0_22, %c0_23, %c0_24] : memref<1x1x32xf32, #tpu.memory_space<vmem>>, vector<1x1x32xf32>
    %55 = vector.shape_cast %54 : vector<1x1x32xf32> to vector<1x32xf32>
    %c0_25 = arith.constant 0 : index
    %c0_26 = arith.constant 0 : index
    %c0_27 = arith.constant 0 : index
    %56 = vector.load %arg9[%c0_25, %c0_26, %c0_27] : memref<1x1x32xf32, #tpu.memory_space<vmem>>, vector<1x1x32xf32>
    %57 = vector.shape_cast %56 : vector<1x1x32xf32> to vector<1x32xf32>
    %cst_28 = arith.constant dense<0.000000e+00> : vector<8xf32>
    %58 = vector.multi_reduction <add>, %53, %cst_28 [1] : vector<8x32xf32> to vector<8xf32>
    %59 = vector.shape_cast %58 : vector<8xf32> to vector<8x1xf32>
    %cst_29 = arith.constant 3.200000e+01 : f32
    %60 = vector.broadcast %cst_29 : f32 to vector<8x1xf32>
    %61 = arith.divf %59, %60 : vector<8x1xf32>
    %62 = vector.broadcast %61 : vector<8x1xf32> to vector<8x32xf32>
    %63 = arith.subf %53, %62 : vector<8x32xf32>
    %64 = arith.mulf %63, %63 : vector<8x32xf32>
    %cst_30 = arith.constant dense<0.000000e+00> : vector<8xf32>
    %65 = vector.multi_reduction <add>, %64, %cst_30 [1] : vector<8x32xf32> to vector<8xf32>
    %66 = vector.shape_cast %65 : vector<8xf32> to vector<8x1xf32>
    %cst_31 = arith.constant 3.200000e+01 : f32
    %67 = vector.broadcast %cst_31 : f32 to vector<8x1xf32>
    %68 = arith.divf %66, %67 : vector<8x1xf32>
    %69 = vector.broadcast %61 : vector<8x1xf32> to vector<8x32xf32>
    %70 = arith.subf %53, %69 : vector<8x32xf32>
    %cst_32 = arith.constant 9.99999974E-6 : f32
    %71 = vector.broadcast %cst_32 : f32 to vector<8x1xf32>
    %72 = arith.addf %68, %71 : vector<8x1xf32>
    %73 = math.rsqrt %72 : vector<8x1xf32>
    %74 = vector.broadcast %73 : vector<8x1xf32> to vector<8x32xf32>
    %75 = arith.mulf %70, %74 : vector<8x32xf32>
    %76 = vector.broadcast %55 : vector<1x32xf32> to vector<8x32xf32>
    %77 = arith.mulf %75, %76 : vector<8x32xf32>
    %78 = vector.broadcast %57 : vector<1x32xf32> to vector<8x32xf32>
    %79 = arith.addf %77, %78 : vector<8x32xf32>
    %80 = arith.truncf %79 : vector<8x32xf32> to vector<8x32xbf16>
    %c0_33 = arith.constant 0 : index
    %c0_34 = arith.constant 0 : index
    %c0_35 = arith.constant 0 : index
    %81 = vector.load %arg10[%c0_33, %c0_34, %c0_35] : memref<1x32x64xbf16, #tpu.memory_space<vmem>>, vector<1x32x64xbf16>
    %82 = vector.shape_cast %81 : vector<1x32x64xbf16> to vector<32x64xbf16>
    %cst_36 = arith.constant dense<0.000000e+00> : vector<8x64xf32>
    %83 = tpu.matmul %80, %82, %cst_36 {dimension_numbers = #tpu.dot_dimension_numbers<[1], [0], [0], [1], [0, 0, 1, 1], [], []>} : vector<8x32xbf16>, vector<32x64xbf16>, vector<8x64xf32> -> vector<8x64xf32>
    %c0_37 = arith.constant 0 : index
    %c0_38 = arith.constant 0 : index
    %c0_39 = arith.constant 0 : index
    %84 = vector.load %arg11[%c0_37, %c0_38, %c0_39] : memref<1x1x64xf32, #tpu.memory_space<vmem>>, vector<1x1x64xf32>
    %85 = vector.shape_cast %84 : vector<1x1x64xf32> to vector<1x64xf32>
    %86 = vector.broadcast %85 : vector<1x64xf32> to vector<8x64xf32>
    %87 = arith.addf %83, %86 : vector<8x64xf32>
    %cst_40 = arith.constant 0.000000e+00 : f32
    %88 = vector.broadcast %cst_40 : f32 to vector<8x64xf32>
    %89 = arith.maximumf %87, %88 : vector<8x64xf32>
    %90 = arith.truncf %89 : vector<8x64xf32> to vector<8x64xbf16>
    %c0_41 = arith.constant 0 : index
    %c0_42 = arith.constant 0 : index
    %c0_43 = arith.constant 0 : index
    %91 = vector.load %arg12[%c0_41, %c0_42, %c0_43] : memref<1x64x32xbf16, #tpu.memory_space<vmem>>, vector<1x64x32xbf16>
    %92 = vector.shape_cast %91 : vector<1x64x32xbf16> to vector<64x32xbf16>
    %cst_44 = arith.constant dense<0.000000e+00> : vector<8x32xf32>
    %93 = tpu.matmul %90, %92, %cst_44 {dimension_numbers = #tpu.dot_dimension_numbers<[1], [0], [0], [1], [0, 0, 1, 1], [], []>} : vector<8x64xbf16>, vector<64x32xbf16>, vector<8x32xf32> -> vector<8x32xf32>
    %c0_45 = arith.constant 0 : index
    %c0_46 = arith.constant 0 : index
    %c0_47 = arith.constant 0 : index
    %94 = vector.load %arg13[%c0_45, %c0_46, %c0_47] : memref<1x1x32xf32, #tpu.memory_space<vmem>>, vector<1x1x32xf32>
    %95 = vector.shape_cast %94 : vector<1x1x32xf32> to vector<1x32xf32>
    %96 = vector.broadcast %95 : vector<1x32xf32> to vector<8x32xf32>
    %97 = arith.addf %93, %96 : vector<8x32xf32>
    %98 = arith.addf %79, %97 : vector<8x32xf32>
    %c0_48 = arith.constant 0 : index
    %c0_49 = arith.constant 0 : index
    %c0_50 = arith.constant 0 : index
    %99 = vector.load %arg14[%c0_48, %c0_49, %c0_50] : memref<1x1x32xf32, #tpu.memory_space<vmem>>, vector<1x1x32xf32>
    %100 = vector.shape_cast %99 : vector<1x1x32xf32> to vector<1x32xf32>
    %c0_51 = arith.constant 0 : index
    %c0_52 = arith.constant 0 : index
    %c0_53 = arith.constant 0 : index
    %101 = vector.load %arg15[%c0_51, %c0_52, %c0_53] : memref<1x1x32xf32, #tpu.memory_space<vmem>>, vector<1x1x32xf32>
    %102 = vector.shape_cast %101 : vector<1x1x32xf32> to vector<1x32xf32>
    %cst_54 = arith.constant dense<0.000000e+00> : vector<8xf32>
    %103 = vector.multi_reduction <add>, %98, %cst_54 [1] : vector<8x32xf32> to vector<8xf32>
    %104 = vector.shape_cast %103 : vector<8xf32> to vector<8x1xf32>
    %cst_55 = arith.constant 3.200000e+01 : f32
    %105 = vector.broadcast %cst_55 : f32 to vector<8x1xf32>
    %106 = arith.divf %104, %105 : vector<8x1xf32>
    %107 = vector.broadcast %106 : vector<8x1xf32> to vector<8x32xf32>
    %108 = arith.subf %98, %107 : vector<8x32xf32>
    %109 = arith.mulf %108, %108 : vector<8x32xf32>
    %cst_56 = arith.constant dense<0.000000e+00> : vector<8xf32>
    %110 = vector.multi_reduction <add>, %109, %cst_56 [1] : vector<8x32xf32> to vector<8xf32>
    %111 = vector.shape_cast %110 : vector<8xf32> to vector<8x1xf32>
    %cst_57 = arith.constant 3.200000e+01 : f32
    %112 = vector.broadcast %cst_57 : f32 to vector<8x1xf32>
    %113 = arith.divf %111, %112 : vector<8x1xf32>
    %114 = vector.broadcast %106 : vector<8x1xf32> to vector<8x32xf32>
    %115 = arith.subf %98, %114 : vector<8x32xf32>
    %cst_58 = arith.constant 9.99999974E-6 : f32
    %116 = vector.broadcast %cst_58 : f32 to vector<8x1xf32>
    %117 = arith.addf %113, %116 : vector<8x1xf32>
    %118 = math.rsqrt %117 : vector<8x1xf32>
    %119 = vector.broadcast %118 : vector<8x1xf32> to vector<8x32xf32>
    %120 = arith.mulf %115, %119 : vector<8x32xf32>
    %121 = vector.broadcast %100 : vector<1x32xf32> to vector<8x32xf32>
    %122 = arith.mulf %120, %121 : vector<8x32xf32>
    %123 = vector.broadcast %102 : vector<1x32xf32> to vector<8x32xf32>
    %124 = arith.addf %122, %123 : vector<8x32xf32>
    %c0_59 = arith.constant 0 : index
    %c0_60 = arith.constant 0 : index
    %125 = vector.load %arg17[%c0_59, %c0_60] : memref<8x32xf32, #tpu.memory_space<vmem>>, vector<8x32xf32>
    tpu.vector_store %arg17[%c0_59, %c0_60], %124 {strides = array<i32>} : memref<8x32xf32, #tpu.memory_space<vmem>>, vector<8x32xf32>,
    %c1_i32 = arith.constant 1 : i32
    %126 = arith.cmpi eq, %arg1, %c1_i32 : i32
    %127 = arith.extui %126 : i1 to i32
    %c0_i32_61 = arith.constant 0 : i32
    %128 = arith.cmpi ne, %127, %c0_i32_61 : i32
    scf.if %128 {
      %c0_62 = arith.constant 0 : index
      %c0_63 = arith.constant 0 : index
      %c0_64 = arith.constant 0 : index
      %129 = vector.load %arg16[%c0_62, %c0_63, %c0_64] : memref<1x8x32xf32, #tpu.memory_space<vmem>>, vector<1x8x32xf32>
      %130 = vector.shape_cast %129 : vector<1x8x32xf32> to vector<8x32xf32>
      %131 = vector.shape_cast %124 : vector<8x32xf32> to vector<1x8x32xf32>
      tpu.vector_store %arg16[%c0_62, %c0_63, %c0_64], %131 {strides = array<i32>} : memref<1x8x32xf32, #tpu.memory_space<vmem>>, vector<1x8x32xf32>,
    } else {
    }
    return
  }
  func.func @transform_0(%arg0: i32, %arg1: i32) -> (i32, i32, i32) {
    %c0_i32 = arith.constant 0 : i32
    %c0_i32_0 = arith.constant 0 : i32
    %c0_i32_1 = arith.constant 0 : i32
    return %arg0, %c0_i32, %c0_i32_0 : i32, i32, i32
  }
  func.func @transform_1(%arg0: i32, %arg1: i32) -> (i32, i32) {
    %c0_i32 = arith.constant 0 : i32
    %c0_i32_0 = arith.constant 0 : i32
    %c0_i32_1 = arith.constant 0 : i32
    return %c0_i32, %c0_i32_0 : i32, i32
  }
  func.func @transform_2(%arg0: i32, %arg1: i32) -> (i32, i32, i32) {
    %c0_i32 = arith.constant 0 : i32
    %c0_i32_0 = arith.constant 0 : i32
    %c0_i32_1 = arith.constant 0 : i32
    return %arg1, %c0_i32, %c0_i32_0 : i32, i32, i32
  }
  func.func @transform_3(%arg0: i32, %arg1: i32) -> (i32, i32, i32) {
    %c0_i32 = arith.constant 0 : i32
    %c0_i32_0 = arith.constant 0 : i32
    %c0_i32_1 = arith.constant 0 : i32
    return %arg1, %c0_i32, %c0_i32_0 : i32, i32, i32
  }
  func.func @transform_4(%arg0: i32, %arg1: i32) -> (i32, i32, i32) {
    %c0_i32 = arith.constant 0 : i32
    %c0_i32_0 = arith.constant 0 : i32
    %c0_i32_1 = arith.constant 0 : i32
    return %arg1, %c0_i32, %c0_i32_0 : i32, i32, i32
  }
  func.func @transform_5(%arg0: i32, %arg1: i32) -> (i32, i32, i32) {
    %c0_i32 = arith.constant 0 : i32
    %c0_i32_0 = arith.constant 0 : i32
    %c0_i32_1 = arith.constant 0 : i32
    return %arg1, %c0_i32, %c0_i32_0 : i32, i32, i32
  }
  func.func @transform_6(%arg0: i32, %arg1: i32) -> (i32, i32, i32) {
    %c0_i32 = arith.constant 0 : i32
    %c0_i32_0 = arith.constant 0 : i32
    %c0_i32_1 = arith.constant 0 : i32
    return %arg1, %c0_i32, %c0_i32_0 : i32, i32, i32
  }
  func.func @transform_7(%arg0: i32, %arg1: i32) -> (i32, i32, i32) {
    %c0_i32 = arith.constant 0 : i32
    %c0_i32_0 = arith.constant 0 : i32
    %c0_i32_1 = arith.constant 0 : i32
    return %arg1, %c0_i32, %c0_i32_0 : i32, i32, i32
  }
  func.func @transform_8(%arg0: i32, %arg1: i32) -> (i32, i32, i32) {
    %c0_i32 = arith.constant 0 : i32
    %c0_i32_0 = arith.constant 0 : i32
    %c0_i32_1 = arith.constant 0 : i32
    return %arg1, %c0_i32, %c0_i32_0 : i32, i32, i32
  }
  func.func @transform_9(%arg0: i32, %arg1: i32) -> (i32, i32, i32) {
    %c0_i32 = arith.constant 0 : i32
    %c0_i32_0 = arith.constant 0 : i32
    %c0_i32_1 = arith.constant 0 : i32
    return %arg1, %c0_i32, %c0_i32_0 : i32, i32, i32
  }
  func.func @transform_10(%arg0: i32, %arg1: i32) -> (i32, i32, i32) {
    %c0_i32 = arith.constant 0 : i32
    %c0_i32_0 = arith.constant 0 : i32
    %c0_i32_1 = arith.constant 0 : i32
    return %arg1, %c0_i32, %c0_i32_0 : i32, i32, i32
  }
  func.func @transform_11(%arg0: i32, %arg1: i32) -> (i32, i32, i32) {
    %c0_i32 = arith.constant 0 : i32
    %c0_i32_0 = arith.constant 0 : i32
    %c0_i32_1 = arith.constant 0 : i32
    return %arg1, %c0_i32, %c0_i32_0 : i32, i32, i32
  }
  func.func @transform_12(%arg0: i32, %arg1: i32) -> (i32, i32, i32) {
    %c0_i32 = arith.constant 0 : i32
    %c0_i32_0 = arith.constant 0 : i32
    %c0_i32_1 = arith.constant 0 : i32
    return %arg1, %c0_i32, %c0_i32_0 : i32, i32, i32
  }
  func.func @transform_13(%arg0: i32, %arg1: i32) -> (i32, i32, i32) {
    %c0_i32 = arith.constant 0 : i32
    %c0_i32_0 = arith.constant 0 : i32
    %c0_i32_1 = arith.constant 0 : i32
    return %arg1, %c0_i32, %c0_i32_0 : i32, i32, i32
  }
  func.func @transform_14(%arg0: i32, %arg1: i32) -> (i32, i32, i32) {
    %c0_i32 = arith.constant 0 : i32
    %c0_i32_0 = arith.constant 0 : i32
    %c0_i32_1 = arith.constant 0 : i32
    return %arg0, %c0_i32, %c0_i32_0 : i32, i32, i32
  }
}

</mosaic_0001>

<bundles_post_ra>
// kernel: tpu_custom_call.1
= control target key start
LH: loop header
LB: loop body
LE: loop exit
PB: predicated region body
PF: predicated region fallthrough
CT: control target
= control target key end

     0   :  { %s3796_s0 = inlined_call_operand.hbm [shape: f32[2,8,32], index: 0, kind: input, shape index: {}]   ;;  %s3797_s1 = inlined_call_operand.hbm [shape: f32[8,8], index: 1, kind: input, shape index: {}]   ;;  %s3798_s2 = inlined_call_operand.vmem [shape: bf16[2,32,96], index: 2, kind: input, shape index: {}]   ;;  %s3799_s3 = inlined_call_operand.vmem [shape: f32[2,1,96], index: 3, kind: input, shape index: {}]   ;;  %s3800_s4 = inlined_call_operand.vmem [shape: bf16[2,32,32], index: 4, kind: input, shape index: {}]   ;;  %s3801_s5 = inlined_call_operand.vmem [shape: f32[2,1,32], index: 5, kind: input, shape index: {}]   ;;  %s3802_s6 = inlined_call_operand.hbm [shape: f32[2,1,32], index: 6, kind: input, shape index: {}]   ;;  %s3803_s7 = inlined_call_operand.hbm [shape: f32[2,1,32], index: 7, kind: input, shape index: {}]   ;;  %s3804_s8 = inlined_call_operand.vmem [shape: bf16[2,32,64], index: 8, kind: input, shape index: {}]   ;;  %s3805_s9 = inlined_call_operand.hbm [shape: f32[2,1,64], index: 9, kind: input, shape index: {}]   ;;  %s3806_s10 = inlined_call_operand.vmem [shape: bf16[2,64,32], index: 10, kind: input, shape index: {}]   ;;  %s3807_s11 = inlined_call_operand.vmem [shape: f32[2,1,32], index: 11, kind: input, shape index: {}]   ;;  %s3808_s12 = inlined_call_operand.vmem [shape: f32[2,1,32], index: 12, kind: input, shape index: {}]   ;;  %s3809_s13 = inlined_call_operand.vmem [shape: f32[2,1,32], index: 13, kind: input, shape index: {}]   ;;  %s3810_s14 = inlined_call_operand.hbm [shape: f32[2,8,32], index: 14, kind: output, shape index: {}]  }
   0x1   :  { %3833 = sst [smem:[#allocation29_spill]] %s3796_s0 }
   0x2   :  { %3834 = sst [smem:[#allocation30_spill]] %s3797_s1 }
   0x3   :  { %3835 = sst [smem:[#allocation31_spill]] %s3798_s2 }
   0x4   :  { %3836 = sst [smem:[#allocation32_spill]] %s3800_s4 }
   0x5   :  { %3837 = sst [smem:[#allocation33_spill]] %s3801_s5 }
   0x6   :  { %3838 = sst [smem:[#allocation34_spill]] %s3802_s6 }
   0x7   :  { %3839 = sst [smem:[#allocation35_spill]] %s3803_s7 }
   0x8   :  { %3840 = sst [smem:[#allocation36_spill]] %s3804_s8 }
   0x9   :  { %3841 = sst [smem:[#allocation37_spill]] %s3805_s9 }
   0xa   :  { %3842 = sst [smem:[#allocation38_spill]] %s3806_s10 }
   0xb   :  { %3843 = sst [smem:[#allocation39_spill]] %s3807_s11 }
   0xc   :  { %3844 = sst [smem:[#allocation40_spill]] %s3808_s12 }
   0xd   :  { %3845 = sst [smem:[#allocation41_spill]] %s3809_s13 }
   0xe   :  { %3846 = sst [smem:[#allocation42_spill]] %s3810_s14 }
   0xf   :  { %19 = vsyncpa [#allocation4], 0 }
  0x10   :  { %21 = vsyncpa [#allocation4 + $0x1], 0 }
  0x11   :  { %22 = vsyncpa [#allocation7], 0 }
  0x12   :  { %23 = vsyncpa [#allocation5], 0 }
  0x13   :  { %25 = vsyncpa [#allocation5 + $0x1], 0  ;;  %s3124_s29 = smov 0   ;;  %s3126_s30 = smov 0  }
  0x14   :  { %s3128_s15 = smov 0   ;;  %s3130_s16 = smov 0  }
  0x15   :  { %s3132_s17 = smov 0   ;;  %s3134_s18 = smov 0  }
  0x16   :  { %s3136_s19 = smov 0   ;;  %s3138_s20 = smov 0  }
  0x17   :  { %s3140_s21 = smov 0   ;;  %s3142_s22 = smov 0  }
  0x18   :  { %s3144_s23 = smov 0  }
  0x19 LB: > { %3847 = sst [smem:[#allocation16_spill]] %s2993_s30  ;;  %p3812_p0 = scmp.ne.s32.totalorder %s3009_s18, %s3005_s17  ;;  %s3029_s23 = sphi %s3144_s23, %s31_s23   ;;  %s3025_s22 = sphi %s3142_s22, %s3917_s22   ;;  %s3021_s21 = sphi %s3140_s21, %s3916_s21   ;;  %s3017_s20 = sphi %s3138_s20, %s3915_s20   ;;  %s3013_s19 = sphi %s3136_s19, %s3914_s19   ;;  %s3009_s18 = sphi %s3134_s18, %s3913_s18   ;;  %s3005_s17 = sphi %s3132_s17, %s3919_s17   ;;  %s3001_s16 = sphi %s3130_s16, %s3918_s16   ;;  %s2997_s15 = sphi %s3128_s15, %s3911_s15   ;;  %s2993_s30 = sphi %s3126_s30, %s3910_s30   ;;  %s2989_s29 = sphi %s3124_s29, %s3909_s29  }
  0x1a   : > { %3848 = sst [smem:[#allocation17_spill]] %s2997_s15  ;;  %p58_p1 = scmp.eq.s32.totalorder %s3029_s23, 0 }
  0x1b   : > { %3849 = sst [smem:[#allocation18_spill]] %s3001_s16  ;;  %p208_p2 = scmp.ne.s32.totalorder %s2997_s15, %s2993_s30 }
  0x1c   : > { %3850 = sst [smem:[#allocation19_spill]] %s3009_s18  ;;  %p59_p3 = por %p58_p1, %p3812_p0 }
  0x1d   : > { %3851 = sst [smem:[#allocation20_spill]] %s3017_s20  ;;  %p2617_p4 = scmp.lt.s32.totalorder %s3029_s23, 4 }
  0x1e   : > { %3852 = sst [smem:[#allocation21_spill]] %s3021_s21  ;;  %p210_p5 = por %p208_p2, %p58_p1 }
  0x1f   : > { %3853 = sst [smem:[#allocation22_spill]] %s3025_s22  ;;  %s457_s26 = sand.u32 1, %s3029_s23  }
  0x20   : > { %3854 = sst [smem:[#allocation23_spill]] %s3029_s23  ;;  %s459_s27 = sand.u32 1, %s3009_s18  }
  0x21   : > { %s2402_s28 = sshll.u32 %s459_s27, 3  ;;  %s2403_s14 = sshll.u32 %s3025_s22, 7 }
  0x22   : > { %s3855_s0 = sld [smem:[#allocation29_spill]]  ;;  %s461_s25 = scalar_lea.vmem [#allocation3], %s2402_s28 }
  0x23   : > { %s468_s24 = sshll.u32 %s461_s25, 4  ;;  %p3198_p6 = pnand %p2617_p4, %p59_p3  ;;  %s3202_s24 = int_to_ptr.vmem [resolvable:$true] %s468_s24 }
  0x24   : > { %p3204_p7 = pnand %p2617_p4, %p210_p5  ;;  %s3208_s13 = scalar_lea.sflag [#allocation4], %s457_s26 }
  0x25   : > { %p2753_p9 = pneg %p3198_p6 }
  0x26   : > { %s3857_s27 = scalar_select %p3204_p7, 1, 0 }
  0x28   : > { %s3196_s12 = scalar_lea.hbm %s3855_s0, %s2403_s14  ;;  %s2756_s28 = scalar_lea.hbm %s3855_s0, 256 }
  0x29   : > { %s2751_s14 = scalar_lea.hbm %s3196_s12, 128  ;;  %p2757_p12 = scmp.lt.u32.totalorder %s3196_s12, %s3855_s0 }
  0x2a   : > { %p2752_p8 = scmp.ne.s32.totalorder %s3196_s12, %s2751_s14  ;;  %p2758_p13 = scmp.lt.u32.totalorder %s2756_s28, %s2751_s14 }
  0x2b   : > { %p2760_p2 = scmp.lt.u32.totalorder %s2751_s14, %s3196_s12 }
  0x2c   : > { %p2754_p10 = pnand %p2753_p9, %p2752_p8  ;;  %p2759_p1 = por %p2758_p13, %p2757_p12 }
  0x2e   : > { %p2755_p11 = pneg %p2754_p10  ;;  %p2761_p3 = por %p2760_p2, %p2759_p1 }
  0x30   : > { %p2762_p4 = pnand %p2761_p3, %p2755_p11 }
  0x32   : > { %2765 = shalt.err (!%p2762_p4)
}
  0x33   : > { %s2766_s26 = scalar_lea.vmem %s3202_s24, 128  ;;  %s3031_s20 = smov [#allocation3]  }
  0x34   : > { %p2767_p5 = scmp.ne.s32.totalorder %s3202_s24, %s2766_s26  ;;  %s2771_s25 = sshll.u32 %s3031_s20, 4  ;;  %s2772_s25 = int_to_ptr.vmem [resolvable:$false] %s2771_s25 }
  0x35   : > { %s2773_s8 = scalar_lea.vmem %s2772_s25, 256  ;;  %p2774_p0 = scmp.lt.s32.totalorder %s3202_s24, %s2772_s25 }
  0x36   : > { %p2769_p8 = pnand %p2767_p5, %p2753_p9  ;;  %p2775_p12 = scmp.lt.s32.totalorder %s2773_s8, %s2766_s26 }
  0x38   : > { %p2770_p10 = pneg %p2769_p8  ;;  %p2776_p13 = por %p2775_p12, %p2774_p0 }
  0x3a   : > { %p2777_p1 = pnand %p2776_p13, %p2770_p10 }
  0x3c   : > { %2780 = shalt.err (!%p2777_p1)
}
  0x3d   : > { %2602 = dma.hbm_to_vmem [thread:$0]  (!%p3198_p6), %s3196_s12, 128, %s3202_s24, %s3208_s13  }
  0x3e   : > { %s40_s11 = sadd.s32 1, %s3021_s21  ;;  %s201_s14 = sadd.s32 1, %s2997_s15 }
  0x3f   : > { %p41_p0 = scmp.ge.s32.totalorder %s40_s11, 2  ;;  %s3239_s28 = sand.u32 1, %s2997_s15  }
  0x40   : > { %s3242_s10 = sshll.u32 %s3021_s21, 4  ;;  %s3859_s26 = sadd.s32 1, %s3025_s22 }
  0x41   : > { %s3921_s11 = smov (%p41_p0, %s40_s11), 0  ;;  %s3923_s26 = smov (!%p41_p0, %s3859_s26), %s3025_s22 }
  0x42   : > { %3858 = sst [smem:[#allocation24_spill]] %s3921_s11  ;;  %s198_s20 = ssub.s32 %s3021_s21, %s3921_s11 }
  0x43   : > { %s3860_s6 = sld [smem:[#allocation34_spill]]  ;;  %p45_p6 = scmp.ge.s32.totalorder %s3923_s26, 2 }
  0x44   : > { %p199_p9 = scmp.eq.s32.totalorder %s198_s20, 0  ;;  %s506_s8 = scalar_lea.vmem [#allocation8], %s3239_s28 }
  0x45   : > { %s513_s0 = sshll.u32 %s506_s8, 4  ;;  %s3925_s26 = smov (%p45_p6, %s3923_s26), 0  ;;  %s3265_s0 = int_to_ptr.vmem [resolvable:$true] %s513_s0 }
  0x46   : > { %3861 = sst [smem:[#allocation25_spill]] %s3925_s26  ;;  %s47_s4 = ssub.s32 %s3025_s22, %s3925_s26 }
  0x47   : > { %s3261_s5 = scalar_select %p199_p9, %s2997_s15, %s201_s14  }
  0x48   : > { %p3267_p11 = scmp.eq.s32.totalorder %s47_s4, 0  ;;  %s3864_s7 = sld [smem:[#allocation35_spill]] }
  0x49   : > { %s3255_s24 = scalar_lea.hbm %s3860_s6, %s3242_s10  ;;  %3862 = sst [smem:[#allocation26_spill]] %s3261_s5 }
  0x4a   : > { %s3863_s25 = scalar_select %p3267_p11, 1, 0 }
  0x4b   : > { %s2781_s20 = scalar_lea.hbm %s3255_s24, 16  ;;  %p3281_p3 = pneg %p3204_p7 }
  0x4c   : > { %p2782_p2 = scmp.ne.s32.totalorder %s3255_s24, %s2781_s20  ;;  %s2786_s26 = scalar_lea.hbm %s3860_s6, 32 }
  0x4d   : > { %p2787_p8 = scmp.lt.u32.totalorder %s3255_s24, %s3860_s6  ;;  %p2788_p10 = scmp.lt.u32.totalorder %s2786_s26, %s2781_s20 }
  0x4e   : > { %s3275_s21 = scalar_lea.hbm %s3864_s7, %s3242_s10  ;;  %p2784_p4 = pnand %p3281_p3, %p2782_p2 }
  0x4f   : > { %p2789_p12 = por %p2788_p10, %p2787_p8  ;;  %p2790_p13 = scmp.lt.u32.totalorder %s2781_s20, %s3255_s24 }
  0x50   : > { %p2785_p5 = pneg %p2784_p4 }
  0x51   : > { %p2791_p1 = por %p2790_p13, %p2789_p12 }
  0x53   : > { %p2792_p0 = pnand %p2791_p1, %p2785_p5 }
  0x55   : > { %2795 = shalt.err (!%p2792_p0)
}
  0x56   : > { %s2796_s11 = scalar_lea.vmem %s3265_s0, 16  ;;  %s3032_s12 = smov [#allocation8]  }
  0x57   : > { %p2797_p6 = scmp.ne.s32.totalorder %s3265_s0, %s2796_s11  ;;  %s2801_s4 = sshll.u32 %s3032_s12, 4  ;;  %s2802_s4 = int_to_ptr.vmem [resolvable:$false] %s2801_s4 }
  0x58   : > { %s2803_s5 = scalar_lea.vmem %s2802_s4, 32  ;;  %p2804_p4 = scmp.lt.s32.totalorder %s3265_s0, %s2802_s4 }
  0x59   : > { %p2799_p9 = pnand %p2797_p6, %p3281_p3  ;;  %p2805_p11 = scmp.lt.s32.totalorder %s2803_s5, %s2796_s11 }
  0x5b   : > { %p2800_p2 = pneg %p2799_p9  ;;  %p2806_p8 = por %p2805_p11, %p2804_p4 }
  0x5d   : > { %p2807_p10 = pnand %p2806_p8, %p2800_p2 }
  0x5f   : > { %2810 = shalt.err (!%p2807_p10)
}
  0x60   : > { %2605 = dma.hbm_to_vmem [thread:$0]  (!%p3204_p7), %s3255_s24, 16, %s3265_s0, %s3208_s13  }
  0x61   : > { %s3866_s22 = sadd.s32 1, %s3009_s18  ;;  %p3867_p5 = scmp.ne.s32.totalorder %s3863_s25, 0 }
  0x62   : > { %s523_s20 = scalar_lea.vmem [#allocation9], %s3239_s28  ;;  %s2811_s11 = scalar_lea.hbm %s3275_s21, 16 }
  0x63   : > { %s3310_s26 = scalar_select %p3867_p5, %s3009_s18, %s3866_s22  }
  0x64   : > { %s530_s14 = sshll.u32 %s523_s20, 4  ;;  %p2812_p11 = scmp.ne.s32.totalorder %s3275_s21, %s2811_s11  ;;  %s531_s14 = int_to_ptr.vmem [resolvable:$true] %s530_s14 }
  0x65   : > { %3868 = sst [smem:[#allocation27_spill]] %s3310_s26  ;;  %s2816_s5 = scalar_lea.hbm %s3864_s7, 32 }
  0x66   : > { %p2814_p12 = pnand %p2812_p11, %p3281_p3  ;;  %p2817_p1 = scmp.lt.u32.totalorder %s3275_s21, %s3864_s7 }
  0x67   : > { %p2818_p0 = scmp.lt.u32.totalorder %s2816_s5, %s2811_s11  ;;  %p2820_p9 = scmp.lt.u32.totalorder %s2811_s11, %s3275_s21 }
  0x68   : > { %p2815_p13 = pneg %p2814_p12 }
  0x69   : > { %p2819_p6 = por %p2818_p0, %p2817_p1 }
  0x6b   : > { %p2821_p2 = por %p2820_p9, %p2819_p6 }
  0x6d   : > { %p2822_p4 = pnand %p2821_p2, %p2815_p13 }
  0x6f   : > { %2825 = shalt.err (!%p2822_p4)
}
  0x70   : > { %s2826_s0 = scalar_lea.vmem %s531_s14, 16  ;;  %s3033_s24 = smov [#allocation9]  }
  0x71   : > { %p2827_p8 = scmp.ne.s32.totalorder %s531_s14, %s2826_s0  ;;  %s2831_s25 = sshll.u32 %s3033_s24, 4  ;;  %s2832_s25 = int_to_ptr.vmem [resolvable:$false] %s2831_s25 }
  0x72   : > { %s2833_s22 = scalar_lea.vmem %s2832_s25, 32  ;;  %p2834_p11 = scmp.lt.s32.totalorder %s531_s14, %s2832_s25 }
  0x73   : > { %p2829_p10 = pnand %p2827_p8, %p3281_p3  ;;  %p2835_p12 = scmp.lt.s32.totalorder %s2833_s22, %s2826_s0 }
  0x75   : > { %p2830_p5 = pneg %p2829_p10  ;;  %p2836_p7 = por %p2835_p12, %p2834_p11 }
  0x77   : > { %p2837_p0 = pnand %p2836_p7, %p2830_p5 }
  0x79   : > { %2840 = shalt.err (!%p2837_p0)
}
  0x7a   : > { %p3869_p1 = scmp.ne.s32.totalorder %s3857_s27, 0  ;;  %s3332_s6 = sadd.s32 4294967295, %s3029_s23  }
  0x7b   : > { %s2398_s15 = sadd.s32 4294967294, %s3029_s23   ;;  %p63_p7 = scmp.ne.s32.totalorder %s3005_s17, %s3001_s16 }
  0x7c   : > { %2608 = dma.hbm_to_vmem [thread:$0]  (!%p3869_p1), %s3275_s21, 16, %s531_s14, %s3208_s13  }
  0x7d   : > { %p3822_p13 = scmp.eq.s32.totalorder %s3332_s6, 0  ;;  %p214_p6 = scmp.ne.s32.totalorder %s2993_s30, %s2989_s29 }
  0x7e   : > { %p420_p9 = scmp.eq.s32.totalorder %s3332_s6, 3  ;;  %p426_p4 = scmp.eq.s32.totalorder %s2398_s15, 3 }
  0x7f   : > { %p3343_p2 = por %p3822_p13, %p63_p7  ;;  %p3349_p8 = por %p214_p6, %p3822_p13 }
  0x80   : > { %p3872_p10 = scmp.ne.s32.totalorder %s3009_s18, %s3005_s17  ;;  %p3360_p11 = por %p426_p4, %p63_p7 }
  0x81   : > { %s3870_s20 = scalar_select %p3343_p2, 1, 0 }
  0x82   : > { %s3871_s21 = scalar_select %p3349_p8, 1, 0 }
  0x83   : > { %p3356_p5 = por %p420_p9, %p3872_p10  ;;  %p2399_p12 = scmp.ge.s32.totalorder %s3029_s23, 1 }
  0x84   : > { %s3874_s29 = scalar_select %p3360_p11, 1, 0 }
  0x85   : > { %s3873_s14 = scalar_select %p3356_p5, 1, 0 }
  0x86   : > { %3875 = sst [smem:[#allocation28_spill]] %s3874_s29  ;;  %p433_p0 = scmp.lt.s32.totalorder %s3029_s23, 5 }
  0x87   : > { %s3034_s12 = smov [#allocation6]   ;;  %s3877_s9 = sld [smem:[#allocation37_spill]] }
  0x88   : > { %p3366_p2 = pnand %p2399_p12, %p433_p0  ;;  %s446_s4 = sshll.u32 %s3034_s12, 4  ;;  %s3381_s4 = int_to_ptr.vmem [resolvable:$true] %s446_s4 }
  0x89   : > { %s548_s25 = scalar_lea.vmem [#allocation10], %s3239_s28 }
  0x8a   : > { %s3876_s11 = scalar_select %p3366_p2, 1, 0 }
  0x8b   : > { %p2595_p7 = pneg %p3366_p2  ;;  %s555_s22 = sshll.u32 %s548_s25, 4  ;;  %s3379_s22 = int_to_ptr.vmem [resolvable:$true] %s555_s22 }
  0x8d   : > { %s3374_s24 = scalar_lea.hbm %s3877_s9, %s3242_s10  ;;  %p3385_p6 = pnand %p2595_p7, %p3822_p13 }
  0x8e   : > { %s2841_s12 = scalar_lea.hbm %s3374_s24, 16  ;;  %s2846_s0 = scalar_lea.hbm %s3877_s9, 32 }
  0x8f   : > { %s3878_s15 = scalar_select %p3385_p6, 1, 0 }
  0x90   : > { %p2842_p9 = scmp.ne.s32.totalorder %s3374_s24, %s2841_s12  ;;  %p2847_p12 = scmp.lt.u32.totalorder %s3374_s24, %s3877_s9 }
  0x91   : > { %p2848_p0 = scmp.lt.u32.totalorder %s2846_s0, %s2841_s12  ;;  %p2850_p5 = scmp.lt.u32.totalorder %s2841_s12, %s3374_s24 }
  0x92   : > { %p2844_p4 = pnand %p2842_p9, %p3281_p3 }
  0x93   : > { %p2849_p11 = por %p2848_p0, %p2847_p12 }
  0x94   : > { %p2845_p10 = pneg %p2844_p4 }
  0x95   : > { %p2851_p7 = por %p2850_p5, %p2849_p11 }
  0x97   : > { %p2852_p13 = pnand %p2851_p7, %p2845_p10 }
  0x99   : > { %2855 = shalt.err (!%p2852_p13)
}
  0x9a   : > { %s2856_s7 = scalar_lea.vmem %s3379_s22, 16  ;;  %s3035_s10 = smov [#allocation10]  }
  0x9b   : > { %p2857_p9 = scmp.ne.s32.totalorder %s3379_s22, %s2856_s7  ;;  %s2861_s5 = sshll.u32 %s3035_s10, 4  ;;  %s2862_s5 = int_to_ptr.vmem [resolvable:$false] %s2861_s5 }
  0x9c   : > { %s2863_s28 = scalar_lea.vmem %s2862_s5, 32  ;;  %p2864_p2 = scmp.lt.s32.totalorder %s3379_s22, %s2862_s5 }
  0x9d   : > { %p2859_p4 = pnand %p2857_p9, %p3281_p3  ;;  %p2865_p6 = scmp.lt.s32.totalorder %s2863_s28, %s2856_s7 }
  0x9f   : > { %p2860_p8 = pneg %p2859_p4  ;;  %p2866_p12 = por %p2865_p6, %p2864_p2 }
  0xa1   : > { %p2867_p0 = pnand %p2866_p12, %p2860_p8 }
  0xa3   : > { %2870 = shalt.err (!%p2867_p0)
}
  0xa4   : > { %2611 = dma.hbm_to_vmem [thread:$0]  (!%p3869_p1), %s3374_s24, 16, %s3379_s22, %s3208_s13  }
  0xa5   : > { %s3879_s1 = sld [smem:[#allocation30_spill]]  ;;  %p3880_p13 = scmp.ne.s32.totalorder %s3878_s15, 0 }
  0xa7   : > { %p2873_p5 = pneg %p3880_p13 }
  0xab   : > { %s2871_s0 = scalar_lea.hbm %s3879_s1, 128 }
  0xac   : > { %p2872_p3 = scmp.ne.s32.totalorder %s3879_s1, %s2871_s0  ;;  %p2878_p11 = scmp.lt.u32.totalorder %s2871_s0, %s3879_s1 }
  0xae   : > { %p2874_p2 = pnand %p2873_p5, %p2872_p3 }
  0xb0   : > { %p2875_p8 = pneg %p2874_p2 }
  0xb2   : > { %p2880_p6 = pnand %p2878_p11, %p2875_p8 }
  0xb4   : > { %2883 = shalt.err (!%p2880_p6)
}
  0xb5   : > { %s2884_s27 = scalar_lea.vmem %s3381_s4, 128  ;;  %p2892_p9 = scmp.lt.s32.totalorder %s3381_s4, %s3381_s4 }
  0xb6   : > { %p2885_p1 = scmp.ne.s32.totalorder %s3381_s4, %s2884_s27  ;;  %p2893_p4 = scmp.lt.s32.totalorder %s2884_s27, %s2884_s27 }
  0xb8   : > { %p2887_p10 = pnand %p2885_p1, %p2873_p5  ;;  %p2894_p12 = por %p2893_p4, %p2892_p9 }
  0xba   : > { %p2888_p7 = pneg %p2887_p10 }
  0xbc   : > { %p2895_p0 = pnand %p2894_p12, %p2888_p7 }
  0xbe   : > { %2898 = shalt.err (!%p2895_p0)
}
  0xbf   : > { %2598 = dma.hbm_to_vmem [thread:$0]  (!%p3880_p13), %s3879_s1, 128, %s3381_s4, [#allocation7]  }
  0xc0   : > { %p3881_p3 = scmp.ne.s32.totalorder %s3876_s11, 0 }
  0xc1   : > { %s592_s22 = sand.u32 (!%p3881_p3), 1, %s3332_s6   ;;  %s3826_s28 = sand.u32 (!%p3881_p3), 1, %s3005_s17  }
  0xc2   : > { %590 = sbr.rel (%p3881_p3) target bundleno = 2958 (0xb8e), region = 76  ;;  %s3438_s12 = sshll.u32 (!%p3881_p3), %s3826_s28, 3 }
  0xc3   : > { %s593_s8 = scalar_lea.sflag (!%p3881_p3), [#allocation4], %s592_s22  ;;  %s596_s15 = scalar_lea.vmem (!%p3881_p3), [#allocation3], %s3438_s12 }
  0xc4   : > { %p3882_p5 = scmp.ne.s32.totalorder (!%p3881_p3), %s3870_s20, 0 }
  0xc9   : > { %2972 = dma.done.wait (%p3882_p5), %s593_s8, 128  }
  0xca   : > { %2974 = vsyncadd (%p3882_p5), %s593_s8, 4294967168  ;;  %p3883_p13 = scmp.eq.s32.totalorder %s3332_s6, 0 }
  0xcc   : > { %2976 = dma.done.wait (%p3883_p13), [#allocation7], 128   ;;  %p3884_p2 = pmov %p3883_p13 }
  0xcd   : > { %s3450_s11 = sand.u32 1, %s2993_s30   ;;  %p3885_p8 = scmp.ne.s32.totalorder %s3871_s21, 0 }
  0xce   : > { %2978 = vsyncadd (%p3884_p2), [#allocation7], 4294967168 }
  0xcf   : > { %2980 = dma.done.wait (%p3885_p8), %s593_s8, 48  }
  0xd0   : > { %2982 = vsyncadd (%p3885_p8), %s593_s8, 4294967248  ;;  %p716_p11 = scmp.lt.s32.totalorder %s3013_s19, 1  ;;  %s3886_s2 = sld [smem:[#allocation31_spill]] }
  0xd1   : > { %s3887_s24 = sld [smem:[#allocation32_spill]]  ;;  %s3889_s18 = sld [smem:[#allocation36_spill]] }
  0xd2   : > { %s3459_s20 = scalar_select %p716_p11, %s3013_s19, 1 }
  0xd3   : > { %s3890_s29 = sld [smem:[#allocation39_spill]]  ;;  %s3891_s16 = sld [smem:[#allocation38_spill]] }
  0xd4   : > { %s2463_s6 = sshll.u32 %s3459_s20, 4  ;;  %s2466_s0 = sshll.u32 %s3459_s20, 5 }
  0xd5   : > { %s3892_s23 = sld [smem:[#allocation40_spill]]  ;;  %s3893_s1 = sld [smem:[#allocation41_spill]] }
  0xd6   : > { %s720_s5 = scalar_lea.vmem %s3886_s2, %s2463_s6  ;;  %s624_s26 = scalar_lea.vmem [#allocation10], %s3450_s11 }
  0xd7   : > { %s3472_s22 = scalar_lea.vmem %s3887_s24, %s2463_s6  ;;  %s3481_s30 = scalar_lea.vmem %s3889_s18, %s2463_s6 }
  0xd8   : > { %s616_s18 = scalar_lea.vmem [#allocation9], %s3450_s11  ;;  %s715_s6 = scalar_lea.vmem [#allocation11], %s3438_s12 }
  0xd9   : > { %s744_s10 = scalar_lea.vmem %s3890_s29, %s3459_s20  ;;  %s3491_s27 = scalar_lea.vmem %s3891_s16, %s2466_s0 }
  0xda   : > { %p2419_p6 = scmp.ne.s32.totalorder %s3013_s19, 0 }
  0xdb   : > { %s747_s28 = scalar_lea.vmem %s3892_s23, %s3459_s20  ;;  %s750_s9 = scalar_lea.vmem %s3893_s1, %s3459_s20  ;;  %v756_v0 = vld [vmem:[%s596_s15] sm:$0xff] (!%p2419_p6)  ;;  %vm757_vm0 = vcmask (!%p2419_p6), 261120  }
  0xdc   : > { %755 = sbr.rel (%p2419_p6) target bundleno = 227 (0xe3), region = 100  ;;  %758 = vst.msk [vmem:[#allocation2] sm:$0xff] (!%p2419_p6), %vm757_vm0, %v756_v0 }
  0xe3 PF: > { %v2721_v1 = vld [vmem:[%s720_s5] sm:$0xff]   ;;  %v3036_v2 = vmov 0.0   ;;  %v2722_v3 = vld [vmem:[%s720_s5 + $0x8] sm:$0xff]   ;;  %vm3037_vm1 = vmmov 0   ;;  %vm784_vm2 = vcmask 261120   ;;  %s3894_s16 = scalar_lea.vmem %s3799_s3, %s3459_s20  ;;  %s3038_s23 = smov 104   ;;  %v844_v18 = vlaneseq }
  0xe4   : > { %2497 = vmatprep.subr.bf16.mxu0 %v3036_v2  ;;  %2505 = vmatprep.subr.bf16.mxu1 %v3036_v2  ;;  %v3509_v4 = vld [vmem:[#allocation2] sm:$0xff]  ;;  %s3039_s29 = smov 120   ;;  %s3040_s15 = smov 96   ;;  %v3042_v16 = vmov 1983009808   ;;  %vm1291_vm3 = vcmask 64512  }
  0xe5   : > { %2498 = vmatpush3.bf16.msra.mxu0 %v2721_v1  ;;  %2501 = vmatprep.mubr.msk.bf16.mxu0 %vm3037_vm1, %v3036_v2  ;;  %v760_v5 = vpack.c.bf16 %v3509_v4, %v3509_v4  ;;  %v2420_v6 = vld [vmem:[%s3894_s16] ss:$0 sm:$0xff]  ;;  %s3041_s21 = smov 112   ;;  %v842_v17 = vunpack.c.l.s4 %v3042_v16  ;;  %v3043_v19 = vmov 1934713408   ;;  %v845_v22 = vshrl.u32 %v844_v18, 7 }
  0xe6   : > { %2499 = vmatprep.subr.bf16.mxu0 %v3036_v2  ;;  %2507 = vmatprep.mubr.msk.bf16.mxu1 %vm3037_vm1, %v3036_v2  ;;  %v874_v20 = vunpack.c.l.s4 %v3043_v19  ;;  %s3044_s5 = smov 64   ;;  %vm1527_vm4 = vcmask 1043456   ;;  %s3046_s0 = smov 8   ;;  %vm1858_vm5 = vcmask 130048   ;;  %vm1860_vm6 = vcmask 195584  }
  0xe7   : > { %v843_v21 = vunpack.c.0.s8 %v842_v17  ;;  %s3047_s25 = smov 24   ;;  %s3895_s24 = sld [smem:[#allocation33_spill]]  ;;  %vm2068_vm7 = vcmask 523264  }
  0xe8   : > { %v875_v25 = vunpack.c.0.s8 %v874_v20  ;;  %p2458_p1 = scmp.ne.s32.totalorder %s3013_s19, 1 }
  0xe9   : > { %2500 = vmatpush3.bf16.msra.mxu0 %v2722_v3  ;;  %v3541_v26 = vsub.s32 %v843_v21, %v845_v22 }
  0xea   : > { %2511 = vmatprep.subr.bf16.mxu0 %v3036_v2  ;;  %v3543_v33 = vsub.s32 %v875_v25, %v845_v22 }
  0xec   : > { %2502 = vmatmul.mubr.msk.bf16.vlgmr.msra.gmra.mrb[0].mxu0 %vm784_vm2, %v760_v5 }
  0xed   : > { %2513 = vmatprep.mubr.msk.bf16.mxu0 %vm3037_vm1, %v3036_v2  ;;  %s3896_s4 = scalar_lea.vmem %s3895_s24, %s3459_s20 }
 0x1bf   : > { %v822_v7 = vpop.f32.mrb[0].mxu0 }
 0x1c0   : > { %v3525_v8 = vadd.f32 %v2420_v6, %v822_v7  ;;  %v2503_v9 = vpop.f32.mrb[1].mxu0 }
 0x1c1   : > { %v825_v10 = vpop.f32.mrb[2].mxu0 }
 0x1c2   : > { %984 = vrot.lane.b32.xlu1 %v3525_v8, %s3038_s23  ;;  %980 = vrot.lane.b32.xlu0 %v3525_v8, %s3039_s29  ;;  %v2504_v11 = vpop.f32.mrb[3].mxu0  ;;  %v828_v15 = vmul.f32 0.35355338, %v3525_v8 }
 0x1c6   : > { %986 = vrot.lane.b32.xlu1 %v3525_v8, %s3040_s15  ;;  %982 = vrot.lane.b32.xlu0 %v3525_v8, %s3041_s21 }
 0x234   : > { %v3531_v12 = vpop.permute.xlu0 %980  ;;  %v3534_v13 = vpop.permute.xlu1 %984 }
 0x235   : > { %988 = vrot.lane.b32.xlu0 %v3531_v12, %s3040_s15 }
 0x238   : > { %v3536_v14 = vpop.permute.xlu0 %982  ;;  %v987_v23 = vpop.permute.xlu1 %986 }
 0x239   : > { %992 = vrot.lane.b32.xlu0 %v3534_v13, %s3040_s15  ;;  %990 = vrot.lane.b32.xlu1 %v3536_v14, %s3040_s15 }
 0x23d   : > { %833 = vrot.lane.b32.xlu0 %v828_v15, %s3041_s21  ;;  %830 = vrot.lane.b32.xlu1 %v828_v15, %s3039_s29 }
 0x241   : > { %836 = vrot.lane.b32.xlu1 %v828_v15, %s3038_s23 }
 0x2a7   : > { %v989_v24 = vpop.permute.xlu0 %988 }
 0x2ab   : > { %v991_v27 = vpop.permute.xlu1 %990  ;;  %v993_v28 = vpop.permute.xlu0 %992 }
 0x2ac   : > { %v998_v29 = vcombine.low %v987_v23, %v991_v27  ;;  %v999_v30 = vcombine.high %v987_v23, %v991_v27  ;;  %v1014_v31 = vcombine.low %v989_v24, %v993_v28  ;;  %v1015_v32 = vcombine.high %v989_v24, %v993_v28 }
 0x2ae   : > { %v1006_v34 = vrot.slane %v998_v29, %v3541_v26  ;;  %v1013_v35 = vrot.slane %v999_v30, %v3541_v26  ;;  %v1022_v36 = vrot.slane %v1014_v31, %v3541_v26  ;;  %v1029_v37 = vrot.slane %v1015_v32, %v3541_v26 }
 0x2af   : > { %v831_v38 = vpop.permute.xlu1 %830  ;;  %v834_v43 = vpop.permute.xlu0 %833 }
 0x2b0   : > { %v1030_v39 = vcombine.low %v1006_v34, %v1022_v36  ;;  %v1031_v40 = vcombine.high %v1006_v34, %v1022_v36  ;;  %v1046_v41 = vcombine.low %v1013_v35, %v1029_v37  ;;  %v1047_v42 = vcombine.high %v1013_v35, %v1029_v37 }
 0x2b1   : > { %v839_v48 = vcombine.low %v828_v15, %v834_v43  ;;  %v840_v49 = vcombine.high %v828_v15, %v834_v43 }
 0x2b2   : > { %v1038_v44 = vrot.slane %v1030_v39, %v3543_v33  ;;  %v1045_v45 = vrot.slane %v1031_v40, %v3543_v33  ;;  %v1054_v46 = vrot.slane %v1046_v41, %v3543_v33  ;;  %v1061_v47 = vrot.slane %v1047_v42, %v3543_v33 }
 0x2b3   : > { %v837_v50 = vpop.permute.xlu1 %836  ;;  %v847_v61 = vrot.slane %v839_v48, %v3541_v26  ;;  %v854_v62 = vrot.slane %v840_v49, %v3541_v26 }
 0x2b4   : > { %v1066_v51 = vcombine.low %v1038_v44, %v1045_v45  ;;  %v2426_v52 = vcombine.high %v1038_v44, %v1045_v45  ;;  %v1082_v53 = vcombine.low %v1054_v46, %v1061_v47  ;;  %v2427_v54 = vcombine.high %v1054_v46, %v1061_v47 }
 0x2b5   : > { %v855_v55 = vcombine.low %v831_v38, %v837_v50  ;;  %v856_v56 = vcombine.high %v831_v38, %v837_v50 }
 0x2b6   : > { %v1073_v57 = vrot.slane %v1066_v51, %v3541_v26  ;;  %v1081_v58 = vrot.slane %v2426_v52, %v3541_v26  ;;  %v1089_v59 = vrot.slane %v1082_v53, %v3541_v26  ;;  %v1097_v60 = vrot.slane %v2427_v54, %v3541_v26 }
 0x2b7   : > { %v863_v63 = vrot.slane %v855_v55, %v3541_v26  ;;  %v870_v0 = vrot.slane %v856_v56, %v3541_v26 }
 0x2b8   : > { %v1098_v1 = vcombine.low %v1073_v57, %v1081_v58  ;;  %v1114_v3 = vcombine.low %v1089_v59, %v1097_v60  ;;  %v1099_v15 = vcombine.high %v1073_v57, %v1081_v58  ;;  %v1115_v16 = vcombine.high %v1089_v59, %v1097_v60 }
 0x2b9   : > { %v871_v5 = vcombine.low %v847_v61, %v863_v63  ;;  %v872_v6 = vcombine.high %v847_v61, %v863_v63  ;;  %v887_v7 = vcombine.low %v854_v62, %v870_v0  ;;  %v888_v9 = vcombine.high %v854_v62, %v870_v0  ;;  %v1290_v61 = vld [vmem:[#allocation6] sm:$0xff] }
 0x2ba   : > { %v1106_v10 = vrot.slane %v1098_v1, %v3543_v33  ;;  %v1122_v11 = vrot.slane %v1114_v3, %v3543_v33  ;;  %v1113_v30 = vrot.slane %v1099_v15, %v3543_v33  ;;  %v1129_v31 = vrot.slane %v1115_v16, %v3543_v33 }
 0x2bb   : > { %v879_v17 = vrot.slane %v871_v5, %v3543_v33  ;;  %v886_v18 = vrot.slane %v872_v6, %v3543_v33  ;;  %v895_v19 = vrot.slane %v887_v7, %v3543_v33  ;;  %v902_v20 = vrot.slane %v888_v9, %v3543_v33 }
 0x2bc   : > { %v1130_v21 = vcombine.low %v1106_v10, %v1122_v11  ;;  %v1131_v22 = vcombine.high %v1106_v10, %v1122_v11  ;;  %v1132_v41 = vcombine.low %v1113_v30, %v1129_v31  ;;  %v1133_v42 = vcombine.high %v1113_v30, %v1129_v31 }
 0x2bd   : > { %v907_v23 = vcombine.low %v879_v17, %v886_v18  ;;  %v2424_v24 = vcombine.high %v879_v17, %v886_v18  ;;  %v923_v25 = vcombine.low %v895_v19, %v902_v20  ;;  %v2425_v27 = vcombine.high %v895_v19, %v902_v20 }
 0x2be   : > { %v1134_v28 = vpack.c.bf16 %v1130_v21, %v1130_v21  ;;  %v1135_v29 = vpack.c.bf16 %v1131_v22, %v1131_v22  ;;  %v1136_v49 = vpack.c.bf16 %v1132_v41, %v1132_v41  ;;  %v1137_v50 = vpack.c.bf16 %v1133_v42, %v1133_v42 }
 0x2bf   : > { %v914_v32 = vrot.slane %v907_v23, %v3541_v26  ;;  %v922_v34 = vrot.slane %v2424_v24, %v3541_v26  ;;  %v930_v35 = vrot.slane %v923_v25, %v3541_v26  ;;  %v938_v36 = vrot.slane %v2425_v27, %v3541_v26 }
 0x2c0   : > { %v1296_v37 = vsel %vm1291_vm3, %v1134_v28, 0  ;;  %v1342_v38 = vsel %vm1291_vm3, %v1135_v29, 0  ;;  %v1388_v55 = vsel %vm1291_vm3, %v1136_v49, 0  ;;  %v1434_v56 = vsel %vm1291_vm3, %v1137_v50, 0 }
 0x2c1   : > { %2506 = vmatpush3.bf16.xpose.msra.mxu1 %v1296_v37  ;;  %2512 = vmatpush3.bf16.xpose.msra.mxu0 %v1342_v38  ;;  %v939_v39 = vcombine.low %v914_v32, %v922_v34  ;;  %v955_v40 = vcombine.low %v930_v35, %v938_v36  ;;  %v940_v44 = vcombine.high %v914_v32, %v922_v34 }
 0x2c2   : > { %2517 = vmatprep.subr.bf16.mxu1 %v3036_v2  ;;  %2523 = vmatprep.subr.bf16.mxu0 %v3036_v2  ;;  %v956_v45 = vcombine.high %v930_v35, %v938_v36 }
 0x2c3   : > { %v947_v43 = vrot.slane %v939_v39, %v3543_v33  ;;  %v963_v46 = vrot.slane %v955_v40, %v3543_v33  ;;  %v954_v53 = vrot.slane %v940_v44, %v3543_v33 }
 0x2c4   : > { %v970_v54 = vrot.slane %v956_v45, %v3543_v33 }
 0x2c5   : > { %v971_v47 = vcombine.low %v947_v43, %v963_v46  ;;  %v972_v48 = vcombine.high %v947_v43, %v963_v46 }
 0x2c6   : > { %v973_v57 = vcombine.low %v954_v53, %v970_v54  ;;  %v974_v58 = vcombine.high %v954_v53, %v970_v54 }
 0x2c7   : > { %v975_v51 = vpack.c.bf16 %v971_v47, %v971_v47  ;;  %v976_v52 = vpack.c.bf16 %v972_v48, %v972_v48 }
 0x2c8   : > { %v977_v59 = vpack.c.bf16 %v973_v57, %v973_v57  ;;  %v978_v60 = vpack.c.bf16 %v974_v58, %v974_v58 }
 0x2c9   : > { %2508 = vmatmul.mubr.msk.bf16.vlgmr.msra.gmra.mrb[0].mxu1 %vm1291_vm3, %v975_v51  ;;  %2514 = vmatmul.mubr.msk.bf16.vlgmr.msra.gmra.mrb[4].mxu0 %vm1291_vm3, %v976_v52 }
 0x2ca   : > { %2518 = vmatpush3.bf16.xpose.msra.mxu1 %v1388_v55  ;;  %2524 = vmatpush3.bf16.xpose.msra.mxu0 %v1434_v56 }
 0x2cb   : > { %2519 = vmatprep.mubr.msk.bf16.mxu1 %vm3037_vm1, %v3036_v2  ;;  %2525 = vmatprep.mubr.msk.bf16.mxu0 %vm3037_vm1, %v3036_v2 }
 0x2cc   : > { %2529 = vmatprep.subr.bf16.mxu1 %v3036_v2  ;;  %2535 = vmatprep.subr.bf16.mxu0 %v3036_v2 }
 0x2d1   : > { %2520 = vmatmul.mubr.msk.bf16.vlgmr.msra.gmra.mrb[4].mxu1 %vm1291_vm3, %v977_v59  ;;  %2526 = vmatmul.mubr.msk.bf16.vlgmr.msra.gmra.mrb[8].mxu0 %vm1291_vm3, %v978_v60 }
 0x2d2   : > { %2531 = vmatprep.mubr.msk.bf16.mxu1 %vm3037_vm1, %v3036_v2  ;;  %2537 = vmatprep.mubr.msk.bf16.mxu0 %vm3037_vm1, %v3036_v2 }
 0x39c   : > { %v1332_v62 = vpop.f32.mrb[0].mxu1  ;;  %v1378_v63 = vpop.f32.mrb[4].mxu0 }
 0x39d   : > { %v1333_v0 = vadd.f32 %v1332_v62, %v1290_v61  ;;  %v1379_v1 = vadd.f32 %v1378_v63, %v1290_v61  ;;  %v2509_v3 = vpop.f32.mrb[1].mxu1  ;;  %v2515_v5 = vpop.f32.mrb[5].mxu0 }
 0x39e   : > { %v1335_v6 = vpop.f32.mrb[2].mxu1  ;;  %v1381_v7 = vpop.f32.mrb[6].mxu0 }
 0x39f   : > { %v2510_v9 = vpop.f32.mrb[3].mxu1  ;;  %v2516_v10 = vpop.f32.mrb[7].mxu0  ;;  %v1476_v11 = vsel %vm1291_vm3, %v1333_v0, -inf  ;;  %v1479_v15 = vsel %vm1291_vm3, %v1379_v1, -inf }
 0x3a0   : > { %1477 = vmax.xlane.f32.xlu0 %v1476_v11  ;;  %1480 = vmax.xlane.f32.xlu1 %v1479_v15 }
 0x3a4   : > { %v1424_v16 = vpop.f32.mrb[4].mxu1  ;;  %v1470_v17 = vpop.f32.mrb[8].mxu0 }
 0x3a5   : > { %v1425_v18 = vadd.f32 %v1424_v16, %v1290_v61  ;;  %v2521_v19 = vpop.f32.mrb[5].mxu1  ;;  %v2527_v20 = vpop.f32.mrb[9].mxu0  ;;  %v1471_v23 = vadd.f32 %v1470_v17, %v1290_v61 }
 0x3a6   : > { %v1427_v21 = vpop.f32.mrb[6].mxu1  ;;  %v1473_v22 = vpop.f32.mrb[10].mxu0 }
 0x3a7   : > { %v2522_v24 = vpop.f32.mrb[7].mxu1  ;;  %v2528_v25 = vpop.f32.mrb[11].mxu0  ;;  %v1482_v27 = vsel %vm1291_vm3, %v1425_v18, -inf  ;;  %v1485_v28 = vsel %vm1291_vm3, %v1471_v23, -inf }
 0x3a8   : > { %1483 = vmax.xlane.f32.xlu0 %v1482_v27 }
 0x3ac   : > { %1486 = vmax.xlane.f32.xlu0 %v1485_v28 }
 0x3b1   : > { %1138 = vrot.lane.b32.xlu1 %v3525_v8, %s3044_s5 }
 0x42d   : > { %v1478_v29 = vpop.xlane.xlu0 %1477  ;;  %v1481_v30 = vpop.xlane.xlu1 %1480 }
 0x42e   : > { %v1488_v31 = vsub.f32 %v1333_v0, %v1478_v29  ;;  %v1489_v32 = vsub.f32 %v1379_v1, %v1481_v30 }
 0x430   : > { %v1492_v34 = vmul.f32 1.442695, %v1488_v31  ;;  %v1494_v35 = vmul.f32 1.442695, %v1489_v32 }
 0x432   : > { %2731 = vpow2.f32 %v1492_v34 }
 0x433   : > { %2733 = vpow2.f32 %v1494_v35 }
 0x435   : > { %v1484_v8 = vpop.xlane.xlu0 %1483 }
 0x436   : > { %v1490_v40 = vsub.f32 %v1425_v18, %v1484_v8 }
 0x438   : > { %v1496_v43 = vmul.f32 1.442695, %v1490_v40 }
 0x439   : > { %v1487_v41 = vpop.xlane.xlu0 %1486 }
 0x43a   : > { %v1491_v42 = vsub.f32 %v1471_v23, %v1487_v41  ;;  %2735 = vpow2.f32 %v1496_v43 }
 0x43c   : > { %v3602_v36 = vpop.eup %2731  ;;  %v1498_v44 = vmul.f32 1.442695, %v1491_v42 }
 0x43d   : > { %v3604_v37 = vpop.eup %2733  ;;  %v1500_v38 = vsel %vm1291_vm3, %v3602_v36, 0.0 }
 0x43e   : > { %1501 = vadd.xlane.f32.xlu1 %v1500_v38  ;;  %v1503_v39 = vsel %vm1291_vm3, %v3604_v37, 0.0  ;;  %2737 = vpow2.f32 %v1498_v44 }
 0x43f   : > { %1504 = vadd.xlane.f32.xlu0 %v1503_v39 }
 0x444   : > { %v3613_v45 = vpop.eup %2735 }
 0x445   : > { %v1506_v47 = vsel %vm1291_vm3, %v3613_v45, 0.0 }
 0x448   : > { %v3615_v46 = vpop.eup %2737 }
 0x44f   : > { %1142 = vrot.lane.b32.xlu1 %v3536_v14, %s3044_s5 }
 0x453   : > { %1144 = vrot.lane.b32.xlu1 %v3534_v13, %s3044_s5  ;;  %v1509_v13 = vsel %vm1291_vm3, %v3615_v46, 0.0 }
 0x455   : > { %1140 = vrot.lane.b32.xlu0 %v3531_v12, %s3044_s5  ;;  %v1139_v12 = vpop.permute.xlu1 %1138 }
 0x474   : > { %1507 = vadd.xlane.f32.xlu0 %v1506_v47 }
 0x477   : > { %1510 = vadd.xlane.f32.xlu1 %v1509_v13 }
 0x4cb   : > { %v1502_v14 = vpop.xlane.xlu1 %1501 }
 0x4cc   : > { %v1505_v48 = vpop.xlane.xlu0 %1504  ;;  %2739 = vrcp.f32 %v1502_v14 }
 0x4cd   : > { %2741 = vrcp.f32 %v1505_v48 }
 0x4cf   : > { %v1143_v49 = vpop.permute.xlu1 %1142 }
 0x4d0   : > { %v1150_v50 = vcombine.low %v1139_v12, %v1143_v49  ;;  %v1151_v51 = vcombine.high %v1139_v12, %v1143_v49  ;;  %v1141_v52 = vpop.permute.xlu0 %1140 }
 0x4d2   : > { %v1158_v56 = vrot.slane %v1150_v50, %v3541_v26  ;;  %v1165_v57 = vrot.slane %v1151_v51, %v3541_v26 }
 0x4d3   : > { %v1145_v53 = vpop.permute.xlu1 %1144 }
 0x4d4   : > { %v1166_v54 = vcombine.low %v1141_v52, %v1145_v53  ;;  %v1167_v55 = vcombine.high %v1141_v52, %v1145_v53  ;;  %v2723_v52 = vld [vmem:[%s3472_s22] sm:$0xff]  }
 0x4d6   : > { %v1174_v58 = vrot.slane %v1166_v54, %v3541_v26  ;;  %v1181_v59 = vrot.slane %v1167_v55, %v3541_v26  ;;  %v2740_v24 = vpop.eup %2739 }
 0x4d7   : > { %v2742_v28 = vpop.eup %2741  ;;  %v1516_v34 = vmul.f32 %v2740_v24, %v3602_v36 }
 0x4d8   : > { %v1182_v60 = vcombine.low %v1158_v56, %v1174_v58  ;;  %v1183_v61 = vcombine.high %v1158_v56, %v1174_v58  ;;  %v1198_v62 = vcombine.low %v1165_v57, %v1181_v59  ;;  %v1199_v63 = vcombine.high %v1165_v57, %v1181_v59 }
 0x4d9   : > { %v1517_v35 = vmul.f32 %v2742_v28, %v3604_v37  ;;  %v1520_v43 = vpack.c.bf16 %v1516_v34, %v1516_v34 }
 0x4da   : > { %v1190_v0 = vrot.slane %v1182_v60, %v3543_v33  ;;  %v1197_v1 = vrot.slane %v1183_v61, %v3543_v33  ;;  %v1206_v3 = vrot.slane %v1198_v62, %v3543_v33  ;;  %v1213_v5 = vrot.slane %v1199_v63, %v3543_v33 }
 0x4db   : > { %v1521_v44 = vpack.c.bf16 %v1517_v35, %v1517_v35 }
 0x4dc   : > { %v1218_v6 = vcombine.low %v1190_v0, %v1197_v1  ;;  %v2428_v7 = vcombine.high %v1190_v0, %v1197_v1  ;;  %v1234_v9 = vcombine.low %v1206_v3, %v1213_v5  ;;  %v2429_v10 = vcombine.high %v1206_v3, %v1213_v5 }
 0x4de   : > { %v1225_v11 = vrot.slane %v1218_v6, %v3541_v26  ;;  %v1233_v15 = vrot.slane %v2428_v7, %v3541_v26  ;;  %v1241_v16 = vrot.slane %v1234_v9, %v3541_v26  ;;  %v1249_v17 = vrot.slane %v2429_v10, %v3541_v26 }
 0x4e0   : > { %v1250_v18 = vcombine.low %v1225_v11, %v1233_v15  ;;  %v1251_v19 = vcombine.high %v1225_v11, %v1233_v15  ;;  %v1266_v20 = vcombine.low %v1241_v16, %v1249_v17  ;;  %v1267_v21 = vcombine.high %v1241_v16, %v1249_v17 }
 0x4e2   : > { %v1258_v22 = vrot.slane %v1250_v18, %v3543_v33  ;;  %v1265_v23 = vrot.slane %v1251_v19, %v3543_v33  ;;  %v1274_v25 = vrot.slane %v1266_v20, %v3543_v33  ;;  %v1281_v27 = vrot.slane %v1267_v21, %v3543_v33  ;;  %v2724_v21 = vld [vmem:[%s3472_s22 + $0x8] sm:$0xff]   ;;  %s3045_s22 = smov 16  }
 0x4e4   : > { %v1282_v29 = vcombine.low %v1258_v22, %v1274_v25  ;;  %v1283_v30 = vcombine.high %v1258_v22, %v1274_v25  ;;  %v1284_v31 = vcombine.low %v1265_v23, %v1281_v27  ;;  %v1285_v32 = vcombine.high %v1265_v23, %v1281_v27 }
 0x4e6   : > { %v1286_v38 = vpack.c.bf16 %v1282_v29, %v1282_v29  ;;  %v1287_v39 = vpack.c.bf16 %v1283_v30, %v1283_v30  ;;  %v1288_v41 = vpack.c.bf16 %v1284_v31, %v1284_v31  ;;  %v1289_v42 = vpack.c.bf16 %v1285_v32, %v1285_v32 }
 0x4e8   : > { %v1529_v8 = vsel %vm1527_vm4, %v1286_v38, 0  ;;  %v1575_v40 = vsel %vm1527_vm4, %v1287_v39, 0  ;;  %v1621_v36 = vsel %vm1527_vm4, %v1288_v41, 0  ;;  %v1667_v37 = vsel %vm1527_vm4, %v1289_v42, 0 }
 0x4e9   : > { %2530 = vmatpush3.bf16.msra.mxu1 %v1529_v8  ;;  %2536 = vmatpush3.bf16.msra.mxu0 %v1575_v40 }
 0x4ea   : > { %2541 = vmatprep.subr.bf16.mxu1 %v3036_v2  ;;  %2547 = vmatprep.subr.bf16.mxu0 %v3036_v2 }
 0x4ec   : > { %2532 = vmatmul.mubr.msk.bf16.vlgmr.msra.gmra.mrb[8].mxu1 %vm1291_vm3, %v1520_v43  ;;  %2538 = vmatmul.mubr.msk.bf16.vlgmr.msra.gmra.mrb[12].mxu0 %vm1291_vm3, %v1521_v44 }
 0x4ed   : > { %2542 = vmatpush3.bf16.msra.mxu1 %v1621_v36  ;;  %2548 = vmatpush3.bf16.msra.mxu0 %v1667_v37 }
 0x4ee   : > { %2543 = vmatprep.mubr.msk.bf16.mxu1 %vm3037_vm1, %v3036_v2  ;;  %2549 = vmatprep.mubr.msk.bf16.mxu0 %vm3037_vm1, %v3036_v2 }
 0x4ef   : > { %2553 = vmatprep.subr.bf16.mxu1 %v3036_v2  ;;  %2561 = vmatprep.subr.bf16.mxu0 %v3036_v2 }
 0x501   : > { %v1508_v47 = vpop.xlane.xlu0 %1507 }
 0x502   : > { %2743 = vrcp.f32 %v1508_v47 }
 0x504   : > { %v1511_v13 = vpop.xlane.xlu1 %1510 }
 0x505   : > { %2745 = vrcp.f32 %v1511_v13 }
 0x50c   : > { %v2744_v12 = vpop.eup %2743 }
 0x50d   : > { %v1518_v14 = vmul.f32 %v2744_v12, %v3613_v45 }
 0x50f   : > { %v2746_v48 = vpop.eup %2745  ;;  %v1522_v49 = vpack.c.bf16 %v1518_v14, %v1518_v14 }
 0x510   : > { %v1519_v50 = vmul.f32 %v2746_v48, %v3615_v46 }
 0x511   : > { %2544 = vmatmul.mubr.msk.bf16.vlgmr.msra.gmra.mrb[12].mxu1 %vm1291_vm3, %v1522_v49 }
 0x512   : > { %v1523_v51 = vpack.c.bf16 %v1519_v50, %v1519_v50  ;;  %2557 = vmatprep.mubr.msk.bf16.mxu1 %vm3037_vm1, %v3036_v2  ;;  %2554 = vmatpush3.bf16.msra.mxu1 %v2723_v52 }
 0x513   : > { %2555 = vmatprep.subr.bf16.mxu1 %v3036_v2 }
 0x514   : > { %2550 = vmatmul.mubr.msk.bf16.vlgmr.msra.gmra.mrb[16].mxu0 %vm1291_vm3, %v1523_v51  ;;  %v2440_v51 = vld [vmem:[%s3896_s4] ss:$0 sm:$0xff] }
 0x515   : > { %2565 = vmatprep.mubr.msk.bf16.mxu0 %vm3037_vm1, %v3036_v2 }
 0x516   : > { %2556 = vmatpush3.bf16.msra.mxu1 %v2724_v21 }
 0x517   : > { %2569 = vmatprep.subr.bf16.mxu1 %v3036_v2 }
 0x5bf   : > { %v1565_v45 = vpop.f32.mrb[8].mxu1  ;;  %v1611_v53 = vpop.f32.mrb[12].mxu0 }
 0x5c0   : > { %v2533_v54 = vpop.f32.mrb[9].mxu1  ;;  %v2539_v55 = vpop.f32.mrb[13].mxu0 }
 0x5c1   : > { %v1568_v46 = vpop.f32.mrb[10].mxu1  ;;  %v1614_v56 = vpop.f32.mrb[14].mxu0 }
 0x5c2   : > { %v2534_v57 = vpop.f32.mrb[11].mxu1  ;;  %v2540_v58 = vpop.f32.mrb[15].mxu0 }
 0x5e4   : > { %v1657_v59 = vpop.f32.mrb[12].mxu1 }
 0x5e5   : > { %v1709_v60 = vcombine.low %v1565_v45, %v1657_v59  ;;  %v1710_v61 = vcombine.high %v1565_v45, %v1657_v59  ;;  %v2545_v62 = vpop.f32.mrb[13].mxu1 }
 0x5e6   : > { %v1660_v63 = vpop.f32.mrb[14].mxu1  ;;  %v2725_v62 = vld [vmem:[%s3481_s30] sm:$0xff]  }
 0x5e7   : > { %v2546_v0 = vpop.f32.mrb[15].mxu1  ;;  %v1703_v1 = vpop.f32.mrb[16].mxu0  ;;  %v1717_v9 = vrot.slane %v1709_v60, %v3541_v26  ;;  %v1724_v10 = vrot.slane %v1710_v61, %v3541_v26  ;;  %2562 = vmatpush3.bf16.msra.mxu0 %v2725_v62  ;;  %v2726_v63 = vld [vmem:[%s3481_s30 + $0x8] sm:$0xff]   ;;  %s3897_s30 = scalar_lea.vmem [#allocation8], %s3450_s11 }
 0x5e8   : > { %v1725_v3 = vcombine.low %v1611_v53, %v1703_v1  ;;  %v1726_v5 = vcombine.high %v1611_v53, %v1703_v1  ;;  %v2551_v6 = vpop.f32.mrb[17].mxu0  ;;  %2563 = vmatprep.subr.bf16.mxu0 %v3036_v2  ;;  %v2728_v0 = vld [vmem:[%s3491_s27 + $0x8] sm:$0xff]  }
 0x5e9   : > { %v1706_v7 = vpop.f32.mrb[18].mxu0 }
 0x5ea   : > { %v1733_v11 = vrot.slane %v1725_v3, %v3541_v26  ;;  %v1740_v15 = vrot.slane %v1726_v5, %v3541_v26  ;;  %v2552_v16 = vpop.f32.mrb[19].mxu0  ;;  %v2444_v7 = vld [vmem:[%s3897_s30] ss:$0 sm:$0xff] }
 0x5eb   : > { %2564 = vmatpush3.bf16.msra.mxu0 %v2726_v63 }
 0x5ec   : > { %v1741_v17 = vcombine.low %v1717_v9, %v1733_v11  ;;  %v1742_v18 = vcombine.high %v1717_v9, %v1733_v11  ;;  %v1757_v19 = vcombine.low %v1724_v10, %v1740_v15  ;;  %v1758_v20 = vcombine.high %v1724_v10, %v1740_v15  ;;  %v2445_v10 = vld [vmem:[%s616_s18] ss:$0 sm:$0xff] }
 0x5ee   : > { %v1749_v22 = vrot.slane %v1741_v17, %v3543_v33  ;;  %v1756_v23 = vrot.slane %v1742_v18, %v3543_v33  ;;  %v1765_v24 = vrot.slane %v1757_v19, %v3543_v33  ;;  %v1772_v25 = vrot.slane %v1758_v20, %v3543_v33  ;;  %v2729_v17 = vld [vmem:[%s3491_s27 + $0x10] sm:$0xff]   ;;  %v2730_v18 = vld [vmem:[%s3491_s27 + $0x18] sm:$0xff]   ;;  %v2446_v19 = vld [vmem:[%s624_s26] ss:$0 sm:$0xff] }
 0x5f0   : > { %v1777_v27 = vcombine.low %v1749_v22, %v1756_v23  ;;  %v2438_v28 = vcombine.high %v1749_v22, %v1756_v23  ;;  %v1793_v29 = vcombine.low %v1765_v24, %v1772_v25  ;;  %v2439_v30 = vcombine.high %v1765_v24, %v1772_v25 }
 0x5f2   : > { %v1784_v31 = vrot.slane %v1777_v27, %v3541_v26  ;;  %v1792_v32 = vrot.slane %v2438_v28, %v3541_v26  ;;  %v1800_v34 = vrot.slane %v1793_v29, %v3541_v26  ;;  %v1808_v35 = vrot.slane %v2439_v30, %v3541_v26  ;;  %v2450_v28 = vld [vmem:[%s744_s10] ss:$0 sm:$0xff] }
 0x5f4   : > { %v1810_v38 = vcombine.high %v1784_v31, %v1792_v32  ;;  %v1826_v39 = vcombine.high %v1800_v34, %v1808_v35  ;;  %v1809_v8 = vcombine.low %v1784_v31, %v1792_v32  ;;  %v1825_v40 = vcombine.low %v1800_v34, %v1808_v35 }
 0x5f6   : > { %v1824_v41 = vrot.slane %v1810_v38, %v3543_v33  ;;  %v1840_v42 = vrot.slane %v1826_v39, %v3543_v33  ;;  %v1817_v43 = vrot.slane %v1809_v8, %v3543_v33  ;;  %v1833_v44 = vrot.slane %v1825_v40, %v3543_v33 }
 0x5f8   : > { %v1843_v36 = vcombine.low %v1824_v41, %v1840_v42  ;;  %v1842_v37 = vcombine.high %v1817_v43, %v1833_v44  ;;  %v1844_v47 = vcombine.high %v1824_v41, %v1840_v42  ;;  %v1841_v13 = vcombine.low %v1817_v43, %v1833_v44 }
 0x5fa   : > { %1850 = vrot.lane.b32.xlu1 %v1843_v36, %s3045_s22  ;;  %1846 = vrot.lane.b32.xlu0 %v1842_v37, %s3046_s0  ;;  %v2456_v37 = vld [vmem:[%s747_s28] ss:$0 sm:$0xff] }
 0x5fe   : > { %1854 = vrot.lane.b32.xlu0 %v1844_v47, %s3047_s25 }
 0x66c   : > { %v1847_v26 = vpop.permute.xlu0 %1846  ;;  %v1851_v12 = vpop.permute.xlu1 %1850 }
 0x66d   : > { %v1857_v14 = vsel %vm1291_vm3, %v1841_v13, %v1847_v26  ;;  %v2457_v13 = vld [vmem:[%s750_s9] ss:$0 sm:$0xff] }
 0x66e   : > { %v1859_v49 = vsel %vm1858_vm5, %v1857_v14, %v1851_v12 }
 0x670   : > { %v1855_v48 = vpop.permute.xlu0 %1854 }
 0x671   : > { %v1861_v33 = vsel %vm1860_vm6, %v1859_v49, %v1855_v48 }
 0x672   : > { %v1862_v50 = vpack.c.bf16 %v1861_v33, %v1861_v33 }
 0x674   : > { %2558 = vmatmul.mubr.msk.bf16.vlgmr.msra.gmra.mrb[16].mxu1 %vm784_vm2, %v1862_v50 }
 0x675   : > { %2577 = vmatprep.mubr.msk.bf16.mxu1 %vm3037_vm1, %v3036_v2 }
 0x747   : > { %v1923_v52 = vpop.f32.mrb[16].mxu1 }
 0x748   : > { %v1924_v45 = vadd.f32 %v2440_v51, %v1923_v52  ;;  %v2559_v53 = vpop.f32.mrb[17].mxu1 }
 0x749   : > { %v1926_v54 = vpop.f32.mrb[18].mxu1 }
 0x74a   : > { %v2560_v55 = vpop.f32.mrb[19].mxu1  ;;  %v1929_v46 = vadd.f32 %v1924_v45, %v3509_v4  ;;  %v2727_v4 = vld [vmem:[%s3491_s27] sm:$0xff]  }
 0x74b   : > { %2570 = vmatpush3.bf16.msra.mxu1 %v2727_v4 }
 0x74c   : > { %v1932_v56 = vsel %vm784_vm2, %v1929_v46, 0.0  ;;  %2571 = vmatprep.subr.bf16.mxu1 %v3036_v2 }
 0x74d   : > { %1933 = vadd.xlane.f32.xlu1 %v1932_v56 }
 0x74f   : > { %2572 = vmatpush3.bf16.msra.mxu1 %v2728_v0 }
 0x750   : > { %2573 = vmatprep.subr.bf16.mxu1 %v3036_v2 }
 0x753   : > { %2574 = vmatpush3.bf16.msra.mxu1 %v2729_v17 }
 0x754   : > { %2575 = vmatprep.subr.bf16.mxu1 %v3036_v2 }
 0x757   : > { %2576 = vmatpush3.bf16.msra.mxu1 %v2730_v18 }
 0x7da   : > { %v1934_v57 = vpop.xlane.xlu1 %1933 }
 0x7db   : > { %v1936_v58 = vmul.f32 0.03125, %v1934_v57 }
 0x7dd   : > { %v1937_v59 = vsub.f32 %v1929_v46, %v1936_v58 }
 0x7df   : > { %v1938_v60 = vmul.f32 %v1937_v59, %v1937_v59 }
 0x7e1   : > { %v1939_v61 = vsel %vm784_vm2, %v1938_v60, 0.0 }
 0x7e2   : > { %1940 = vadd.xlane.f32.xlu0 %v1939_v61 }
 0x86f   : > { %v1941_v1 = vpop.xlane.xlu0 %1940 }
 0x870   : > { %v1942_v3 = vmul.f32 0.03125, %v1941_v1 }
 0x872   : > { %v1943_v5 = vadd.f32 1e-05, %v1942_v3 }
 0x874   : > { %2747 = vrsqrt.f32 %v1943_v5 }
 0x87e   : > { %v2748_v6 = vpop.eup %2747 }
 0x87f   : > { %v1945_v9 = vmul.f32 %v2748_v6, %v1937_v59 }
 0x881   : > { %v1952_v11 = vmul.f32 %v2444_v7, %v1945_v9 }
 0x883   : > { %v1959_v15 = vadd.f32 %v2445_v10, %v1952_v11 }
 0x885   : > { %v1960_v16 = vpack.c.bf16 %v1959_v15, %v1959_v15 }
 0x887   : > { %2566 = vmatmul.mubr.msk.bf16.vlgmr.msra.gmra.mrb[20].mxu0 %vm784_vm2, %v1960_v16 }
 0x95a   : > { %v2021_v20 = vpop.f32.mrb[20].mxu0 }
 0x95b   : > { %v2022_v21 = vadd.f32 %v2446_v19, %v2021_v20  ;;  %v2567_v22 = vpop.f32.mrb[21].mxu0 }
 0x95c   : > { %v2024_v23 = vpop.f32.mrb[22].mxu0 }
 0x95d   : > { %v2027_v24 = vmax.f32 %v2022_v21, 0.0  ;;  %v2568_v25 = vpop.f32.mrb[23].mxu0 }
 0x95f   : > { %v2028_v27 = vpack.c.bf16 %v2027_v24, %v2027_v24 }
 0x961   : > { %2578 = vmatmul.mubr.msk.bf16.vlgmr.msra.gmra.mrb[20].mxu1 %vm2068_vm7, %v2028_v27 }
 0xa34   : > { %v2106_v29 = vpop.f32.mrb[20].mxu1 }
 0xa35   : > { %v2107_v2 = vadd.f32 %v2450_v28, %v2106_v29  ;;  %v2579_v30 = vpop.f32.mrb[21].mxu1 }
 0xa36   : > { %v2109_v31 = vpop.f32.mrb[22].mxu1 }
 0xa37   : > { %v2580_v32 = vpop.f32.mrb[23].mxu1  ;;  %v2112_v34 = vadd.f32 %v2107_v2, %v1959_v15 }
 0xa39   : > { %v2115_v35 = vsel %vm784_vm2, %v2112_v34, 0.0 }
 0xa3a   : > { %2116 = vadd.xlane.f32.xlu0 %v2115_v35 }
 0xac7   : > { %v2117_v38 = vpop.xlane.xlu0 %2116 }
 0xac8   : > { %v2118_v39 = vmul.f32 0.03125, %v2117_v38 }
 0xaca   : > { %v2119_v8 = vsub.f32 %v2112_v34, %v2118_v39 }
 0xacc   : > { %v2120_v40 = vmul.f32 %v2119_v8, %v2119_v8 }
 0xace   : > { %v2121_v41 = vsel %vm784_vm2, %v2120_v40, 0.0 }
 0xacf   : > { %2122 = vadd.xlane.f32.xlu1 %v2121_v41 }
 0xb5c   : > { %v2123_v42 = vpop.xlane.xlu1 %2122 }
 0xb5d   : > { %v2124_v43 = vmul.f32 0.03125, %v2123_v42 }
 0xb5f   : > { %v2125_v44 = vadd.f32 1e-05, %v2124_v43 }
 0xb61   : > { %2749 = vrsqrt.f32 %v2125_v44 }
 0xb6b   : > { %v2750_v36 = vpop.eup %2749 }
 0xb6c   : > { %v2127_v47 = vmul.f32 %v2750_v36, %v2119_v8  ;;  %2146 = sbr.rel (%p2458_p1) target bundleno = 2931 (0xb73), region = 104 }
 0xb6e   : > { %v2134_v26 = vmul.f32 %v2456_v37, %v2127_v47 }
 0xb70   : > { %v2141_v12 = vadd.f32 %v2457_v13, %v2134_v26 }
 0xb72   : > { %2142 = vst.msk [vmem:[#allocation2] sm:$0xff] %vm784_vm2, %v2141_v12  ;;  %2147 = vst.msk [vmem:[%s715_s6] sm:$0xff] (!%p2458_p1), %vm784_vm2, %v2141_v12 }
 0xb73 PF: > { %s3901_s23 = sld [smem:[#allocation20_spill]]  ;;  %s3902_s9 = sld [smem:[#allocation42_spill]] }
 0xb74   : > { %s2162_s21 = sshll.u32 %s715_s6, 4  ;;  %s3903_s19 = sand.u32 1, %s3005_s17   ;;  %s2163_s21 = int_to_ptr.vmem [resolvable:$true] %s2162_s21 }
 0xb75   : > { %s2149_s5 = scalar_lea.sflag [#allocation5], %s3903_s19  ;;  %s2899_s22 = scalar_lea.vmem %s2163_s21, 128 }
 0xb76   : > { %p2900_p10 = scmp.ne.s32.totalorder %s2163_s21, %s2899_s22  ;;  %p3904_p7 = scmp.ne.s32.totalorder %s3873_s14, 0 }
 0xb77   : > { %s3048_s0 = smov [#allocation11]  }
 0xb78   : > { %p2901_p9 = pnand %p2900_p10, %p3904_p7  ;;  %s2903_s25 = sshll.u32 %s3048_s0, 4  ;;  %s2904_s25 = int_to_ptr.vmem [resolvable:$false] %s2903_s25 }
 0xb79   : > { %s2460_s28 = sshll.u32 %s3901_s23, 7  ;;  %s2905_s7 = scalar_lea.vmem %s2904_s25, 256 }
 0xb7a   : > { %s3736_s15 = scalar_lea.hbm %s3902_s9, %s2460_s28  ;;  %p2902_p4 = pneg %p2901_p9 }
 0xb7b   : > { %p2906_p12 = scmp.lt.s32.totalorder %s2163_s21, %s2904_s25  ;;  %p2907_p0 = scmp.lt.s32.totalorder %s2905_s7, %s2899_s22 }
 0xb7d   : > { %p2908_p3 = por %p2907_p0, %p2906_p12 }
 0xb7f   : > { %p2909_p5 = pnand %p2908_p3, %p2902_p4 }
 0xb81   : > { %2912 = shalt.err (!%p2909_p5)
}
 0xb82   : > { %s2913_s12 = scalar_lea.hbm %s3736_s15, 128  ;;  %s2917_s24 = scalar_lea.hbm %s3902_s9, 256 }
 0xb83   : > { %p2914_p13 = scmp.ne.s32.totalorder %s3736_s15, %s2913_s12  ;;  %p2918_p11 = scmp.lt.u32.totalorder %s3736_s15, %s3902_s9 }
 0xb84   : > { %p2919_p6 = scmp.lt.u32.totalorder %s2917_s24, %s2913_s12  ;;  %p2921_p10 = scmp.lt.u32.totalorder %s2913_s12, %s3736_s15 }
 0xb85   : > { %p2915_p2 = pnand %p2914_p13, %p3904_p7 }
 0xb86   : > { %p2920_p1 = por %p2919_p6, %p2918_p11 }
 0xb87   : > { %p2916_p8 = pneg %p2915_p2 }
 0xb88   : > { %p2922_p9 = por %p2921_p10, %p2920_p1 }
 0xb8a   : > { %p2923_p4 = pnand %p2922_p9, %p2916_p8 }
 0xb8c   : > { %2926 = shalt.err (!%p2923_p4)
}
 0xb8d   : > { %2593 = dma.vmem_to_hbm [thread:$0]  (%p3904_p7), %s2163_s21, 128, %s3736_s15, %s2149_s5  }
 0xb8e PF: > { %s3905_s8 = sld [smem:[#allocation23_spill]]  ;;  %s3906_s18 = sld [smem:[#allocation18_spill]] }
 0xb8f   : > { %s3907_s1 = sld [smem:[#allocation28_spill]] }
 0xb94   : > { %p2619_p12 = scmp.ge.s32.totalorder %s3905_s8, 2  ;;  %s2174_s11 = sand.u32 1, %s3906_s18  }
 0xb95   : > { %p3908_p0 = scmp.ne.s32.totalorder %s3907_s1, 0  ;;  %s2175_s10 = scalar_lea.sflag [#allocation5], %s2174_s11 }
 0xb97   : > { %p2613_p3 = pnand %p2619_p12, %p3908_p0 }
 0xb99   : > { %2984 = dma.done.wait (!%p2613_p3), %s2175_s10, 128  }
 0xb9a   : > { %2986 = vsyncadd (!%p2613_p3), %s2175_s10, 4294967168  ;;  %s31_s23 = sadd.s32 1, %s3905_s8   ;;  %s3909_s29 = sld [smem:[#allocation16_spill]] }
 0xb9b   : > { %p28_p5 = scmp.ge.s32.totalorder %s31_s23, 6   ;;  %s3910_s30 = sld [smem:[#allocation17_spill]] }
 0xb9c   : > { %s3911_s15 = sld [smem:[#allocation26_spill]]  ;;  %s3912_s14 = sld [smem:[#allocation19_spill]] }
 0xb9d   : > { %s3913_s18 = sld [smem:[#allocation27_spill]]  ;;  %s3914_s19 = sld [smem:[#allocation21_spill]] }
 0xb9e   : > { %s3915_s20 = sld [smem:[#allocation22_spill]]  ;;  %s3916_s21 = sld [smem:[#allocation24_spill]] }
 0xb9f   : > { %s3917_s22 = sld [smem:[#allocation25_spill]]  ;;  %s3918_s16 = smov %s3005_s17 }
 0xba0   :  { %30 = sbr.rel (!%p28_p5) target bundleno = 25 (0x19), region = 193 }
 0xba2   : > { %s3919_s17 = smov %s3912_s14 }
 0xba7   :  { %2180 = vsyncpa [#allocation4], 1 }
 0xba8   :  { %2182 = vsyncpa [#allocation4 + $0x1], 1 }
 0xba9   :  { %2183 = vsyncpa [#allocation7], 1 }
 0xbaa   :  { %2184 = vsyncpa [#allocation5], 1 }
 0xbab   :  { %2186 = vsyncpa [#allocation5 + $0x1], 1 }

</bundles_post_ra>
